<compile_context>
chip_gen: v5e
topology: v5e:2x2
jax: 0.10.0
libtpu: 0.0.40
codegen_flags: <defaults>
</compile_context>

<pallas_src>
import math
import numpy as np
import jax
import jax.numpy as jnp
from jax import lax
from jax.experimental import pallas as pl
from jax.experimental.pallas import tpu as pltpu


# ----------------------------- config (synthetic) ----------------------------
BATCH = 2
SEQ = 8
HIDDEN = 32
NUM_HEADS = 4
HEAD_DIM = HIDDEN // NUM_HEADS
INTERMEDIATE = 64
VOCAB = 100
TYPE_VOCAB = 2
NUM_LAYERS = 2
NUM_CLUSTERS = 4
GAMA = 0.5
POOL_MODE = "avg"
LN_EPS = 1e-12
HEAD_PAD = 128          # lane-dense span-head output width (columns 0:4 are real)


# ----------------------------- shared math helpers ---------------------------
def _ln(x, g, b):
    m = jnp.mean(x, axis=-1, keepdims=True)
    v = jnp.mean((x - m) ** 2, axis=-1, keepdims=True)
    return (x - m) * lax.rsqrt(v + LN_EPS) * g + b


def _gelu(x):
    # TODO(synk): BERT reference uses exact erf-GELU; tanh approximation used here.
    c = math.sqrt(2.0 / math.pi)
    return 0.5 * x * (1.0 + jnp.tanh(c * (x + 0.044715 * x * x * x)))


# ----------------------------- fused encoder kernel --------------------------
def fused_encoder_kernel(x_ref, mask_ref,
                         wqkv_ref, bqkv_ref, wo_ref,
                         w1_ref, b1_ref, w2_ref, hvec_ref,
                         head_w_ref, head_b_ref,
                         seq_out_ref, logits_ref,
                         x_acc):
    # grid = (B, L); pl.program_id(1) is the layer index.
    # x_ref:      (S, H)          one batch row (only read at l == 0)
    # mask_ref:   (1, S)          additive attention bias
    # wqkv_ref:   (3*NH, H, HD)   bf16 per-head Q/K/V weights (1/sqrt(HD) folded in Q)
    # bqkv_ref:   (3*NH, 1, HD)   f32 per-head Q/K/V biases
    # wo_ref:     (NH, HD, H)     bf16 per-head slices of the output projection
    # w1_ref:     (H, I) bf16,  b1_ref: (1, I) f32,  w2_ref: (I, H) bf16
    # hvec_ref:   (6, H) f32 rows = [bo, ln1_g, ln1_b, b2, ln2_g, ln2_b]
    # head_w_ref: (H, 128) bf16 (cols 0:2 start head, 2:4 end head, rest zero-pad)
    # head_b_ref: (1, 128) f32
    # x_acc:      (S, H) f32 VMEM scratch carrying the activation across layers
    l = pl.program_id(1)

    @pl.when(l == 0)
    def _():
        x_acc[...] = x_ref[...].astype(jnp.float32)

    x = x_acc[...]                                        # (S, H) f32
    x_bf = x.astype(jnp.bfloat16)
    # Hoist the mask broadcast once per grid step (not once per head).
    mask2d = jnp.broadcast_to(mask_ref[...].astype(jnp.float32), (SEQ, SEQ))

    hv = hvec_ref[...]
    bo, ln1g, ln1b = hv[0:1], hv[1:2], hv[2:3]
    b2, ln2g, ln2b = hv[3:4], hv[4:5], hv[5:6]

    # ---- multi-head self-attention: heads on the leading (sublane) axis; no lane
    #      slicing, no lane concat, no explicit K transpose. Scale folded into Q.
    attn = jnp.zeros((SEQ, HIDDEN), jnp.float32)
    for h in range(NUM_HEADS):
        wq = wqkv_ref[0 * NUM_HEADS + h]
        wk = wqkv_ref[1 * NUM_HEADS + h]
        wv = wqkv_ref[2 * NUM_HEADS + h]
        qh = (jnp.dot(x_bf, wq, preferred_element_type=jnp.float32)
              + bqkv_ref[0 * NUM_HEADS + h]).astype(jnp.bfloat16)
        kh = (jnp.dot(x_bf, wk, preferred_element_type=jnp.float32)
              + bqkv_ref[1 * NUM_HEADS + h]).astype(jnp.bfloat16)
        vh = (jnp.dot(x_bf, wv, preferred_element_type=jnp.float32)
              + bqkv_ref[2 * NUM_HEADS + h]).astype(jnp.bfloat16)
        # QK^T via dot_general contracting on the last dims (no materialized .T).
        s = lax.dot_general(qh, kh, (((1,), (1,)), ((), ())),
                            preferred_element_type=jnp.float32) + mask2d
        s = s - jnp.max(s, axis=-1, keepdims=True)
        p = jnp.exp(s)
        # approx reciprocal (EUP slot): probs deviate ~1e-3 rel. from exact softmax.
        p = p * pl.reciprocal(jnp.sum(p, axis=-1, keepdims=True), approx=True)
        ctx = jnp.dot(p.astype(jnp.bfloat16), vh,
                      preferred_element_type=jnp.float32)
        # Accumulate straight through the per-head output projection (no concat).
        attn = attn + jnp.dot(ctx.astype(jnp.bfloat16), wo_ref[h],
                              preferred_element_type=jnp.float32)
    attn = attn + bo
    h1 = _ln(x + attn, ln1g, ln1b)

    # ---- feed-forward
    inter = _gelu(jnp.dot(h1.astype(jnp.bfloat16), w1_ref[...],
                          preferred_element_type=jnp.float32) + b1_ref[...])
    ffn = jnp.dot(inter.astype(jnp.bfloat16), w2_ref[...],
                  preferred_element_type=jnp.float32) + b2
    x_new = _ln(h1 + ffn, ln2g, ln2b)
    x_acc[...] = x_new

    # ---- last layer: write sequence output + lane-dense (S, 128) span logits
    @pl.when(l == pl.num_programs(1) - 1)
    def _():
        # TODO(synk): at real sizes H is a multiple of 128, making this store
        #             lane-dense too; at toy H=32 it is a masked partial store.
        seq_out_ref[...] = x_new.astype(seq_out_ref.dtype)
        logits = jnp.dot(x_new.astype(jnp.bfloat16), head_w_ref[...],
                         preferred_element_type=jnp.float32) + head_b_ref[...]
        logits_ref[...] = logits.astype(logits_ref.dtype)


def run_fused_encoder(x, mask_bias, wp):
    B, S, H = x.shape
    seq_out, logits_pad = pl.pallas_call(
        fused_encoder_kernel,
        out_shape=(jax.ShapeDtypeStruct((B, S, H), jnp.float32),
                   jax.ShapeDtypeStruct((B, S, HEAD_PAD), jnp.float32)),
        grid=(B, NUM_LAYERS),
        in_specs=[
            pl.BlockSpec((None, S, H), lambda b, l: (b, 0, 0)),                    # x
            pl.BlockSpec((None, 1, S), lambda b, l: (b, 0, 0)),                    # mask
            pl.BlockSpec((None, 3 * NUM_HEADS, H, HEAD_DIM),
                         lambda b, l: (l, 0, 0, 0)),                               # wqkv
            pl.BlockSpec((None, 3 * NUM_HEADS, 1, HEAD_DIM),
                         lambda b, l: (l, 0, 0, 0)),                               # bqkv
            pl.BlockSpec((None, NUM_HEADS, HEAD_DIM, H),
                         lambda b, l: (l, 0, 0, 0)),                               # wo
            pl.BlockSpec((None, H, INTERMEDIATE), lambda b, l: (l, 0, 0)),         # w1
            pl.BlockSpec((None, 1, INTERMEDIATE), lambda b, l: (l, 0, 0)),         # b1
            pl.BlockSpec((None, INTERMEDIATE, H), lambda b, l: (l, 0, 0)),         # w2
            pl.BlockSpec((None, 6, H), lambda b, l: (l, 0, 0)),                    # hvec
            pl.BlockSpec((H, HEAD_PAD), lambda b, l: (0, 0)),                      # head_w
            pl.BlockSpec((1, HEAD_PAD), lambda b, l: (0, 0)),                      # head_b
        ],
        out_specs=(pl.BlockSpec((None, S, H), lambda b, l: (b, 0, 0)),
                   pl.BlockSpec((None, S, HEAD_PAD), lambda b, l: (b, 0, 0))),
        scratch_shapes=[pltpu.VMEM((S, H), jnp.float32)],
        compiler_params=pltpu.CompilerParams(
            dimension_semantics=("parallel", "arbitrary")),   # batch across TCs
    )(x, mask_bias,
      wp["wqkv"], wp["bqkv"], wp["wo"],
      wp["w1"], wp["b1"], wp["w2"], wp["hvec"],
      wp["head_w"], wp["head_b"])
    return seq_out, logits_pad[..., :4]


# ----------------------------- parameter init --------------------------------
def init_params(key):
    def normal(k, shape, std=0.02):
        return jax.random.normal(k, shape, jnp.float32) * std

    n_keys = 6 + NUM_LAYERS * 6
    keys = iter(jax.random.split(key, n_keys))

    word_emb = normal(next(keys), (VOCAB, HIDDEN))
    pos_emb = normal(next(keys), (SEQ, HIDDEN))
    tok_emb = normal(next(keys), (TYPE_VOCAB, HIDDEN))
    start_w = normal(next(keys), (HIDDEN, 2))
    end_w = normal(next(keys), (HIDDEN, 2))
    cluster_w = normal(next(keys), (HIDDEN, NUM_CLUSTERS))

    scale = 1.0 / math.sqrt(HEAD_DIM)

    def per_head(w):  # (H, H) -> (NH, H, HD): head h = columns [h*HD:(h+1)*HD]
        return jnp.transpose(w.reshape(HIDDEN, NUM_HEADS, HEAD_DIM), (1, 0, 2))

    wqkv_l, bqkv_l, wo_l, w1_l, w2_l = [], [], [], [], []
    for _ in range(NUM_LAYERS):
        wq = normal(next(keys), (HIDDEN, HIDDEN))
        wk = normal(next(keys), (HIDDEN, HIDDEN))
        wv = normal(next(keys), (HIDDEN, HIDDEN))
        wo = normal(next(keys), (HIDDEN, HIDDEN))
        w1_l.append(normal(next(keys), (HIDDEN, INTERMEDIATE)))
        w2_l.append(normal(next(keys), (INTERMEDIATE, HIDDEN)))
        # per-head packing; fold 1/sqrt(HD) into Q weights (and Q bias) at pack time
        wqkv_l.append(jnp.concatenate(
            [per_head(wq) * scale, per_head(wk), per_head(wv)], axis=0))  # (3NH,H,HD)
        bq = jnp.zeros((NUM_HEADS, 1, HEAD_DIM), jnp.float32) * scale
        bk = jnp.zeros((NUM_HEADS, 1, HEAD_DIM), jnp.float32)
        bv = jnp.zeros((NUM_HEADS, 1, HEAD_DIM), jnp.float32)
        bqkv_l.append(jnp.concatenate([bq, bk, bv], axis=0))              # (3NH,1,HD)
        # rows of the output projection grouped by head: ctx_h @ wo[h*HD:(h+1)*HD,:]
        wo_l.append(wo.reshape(NUM_HEADS, HEAD_DIM, HIDDEN))              # (NH,HD,H)

    ones_h = jnp.ones((HIDDEN,), jnp.float32)
    zeros_h = jnp.zeros((HIDDEN,), jnp.float32)
    # rows: [bo, ln1_g, ln1_b, b2, ln2_g, ln2_b]
    hvec_layer = jnp.stack([zeros_h, ones_h, zeros_h, zeros_h, ones_h, zeros_h])

    head_w = jnp.concatenate([start_w, end_w], axis=1)                    # (H, 4)
    head_w = jnp.pad(head_w, ((0, 0), (0, HEAD_PAD - 4)))                 # (H, 128)

    enc = {
        "wqkv": jnp.stack(wqkv_l).astype(jnp.bfloat16),    # (L, 3NH, H, HD) bf16
        "bqkv": jnp.stack(bqkv_l),                         # (L, 3NH, 1, HD) f32
        "wo": jnp.stack(wo_l).astype(jnp.bfloat16),        # (L, NH, HD, H) bf16
        "w1": jnp.stack(w1_l).astype(jnp.bfloat16),        # (L, H, I) bf16
        "b1": jnp.zeros((NUM_LAYERS, 1, INTERMEDIATE), jnp.float32),
        "w2": jnp.stack(w2_l).astype(jnp.bfloat16),        # (L, I, H) bf16
        "hvec": jnp.stack([hvec_layer] * NUM_LAYERS),      # (L, 6, H) f32
        "head_w": head_w.astype(jnp.bfloat16),             # (H, 128) bf16
        "head_b": jnp.zeros((1, HEAD_PAD), jnp.float32),   # (1, 128) f32
    }

    return {
        "word_emb": word_emb,
        "pos_emb": pos_emb,
        "tok_emb": tok_emb,
        "emb_ln_g": jnp.ones((HIDDEN,), jnp.float32),
        "emb_ln_b": jnp.zeros((HIDDEN,), jnp.float32),
        "cluster_w": cluster_w,
        "cluster_b": jnp.zeros((NUM_CLUSTERS,), jnp.float32),
        "enc": enc,
    }


# ----------------------------- model forward ----------------------------------
@jax.jit
def encode(params, input_ids, token_type_ids, attention_mask):
    B, S = input_ids.shape
    x = (params["word_emb"][input_ids]
         + params["pos_emb"][None, :, :]
         + params["tok_emb"][token_type_ids])
    x = _ln(x, params["emb_ln_g"], params["emb_ln_b"]).astype(jnp.float32)
    mask_bias = ((1.0 - attention_mask.astype(jnp.float32)) * -10000.0
                 ).reshape(B, 1, S)
    seq_out, logits = run_fused_encoder(x, mask_bias, params["enc"])
    return seq_out, logits


def _span_ce(logits2, labels):
    # logits2: (N, 2) f32, labels: (N,) int32.  Plain JAX (fuses with logits).
    lse = jax.nn.logsumexp(logits2, axis=-1)
    picked = jnp.take_along_axis(logits2, labels[:, None], axis=-1)[:, 0]
    return jnp.mean(lse - picked)


def forward(params, input_ids, token_type_ids=None, attention_mask=None,
            start_positions=None, end_positions=None, span_positions=None,
            input_truth=None, cluster_var=None):
    if token_type_ids is None:
        token_type_ids = jnp.zeros_like(input_ids)
    if attention_mask is None:
        attention_mask = jnp.ones_like(input_ids)

    seq_out, logits = encode(params, input_ids, token_type_ids, attention_mask)
    start_logits = logits[..., 0:2]           # (B, S, 2)
    end_logits = logits[..., 2:4]             # (B, S, 2)

    if start_positions is None or end_positions is None:
        # PyTorch reference returns a torch.ones placeholder for span_logits.
        B, S = input_ids.shape
        span_logits = jnp.ones((B, S, S), jnp.float32)
        return start_logits, end_logits, span_logits

    start_flat = start_positions.reshape(-1).astype(jnp.int32)
    end_flat = end_positions.reshape(-1).astype(jnp.int32)
    total_loss = (_span_ce(start_logits.reshape(-1, 2), start_flat)
                  + _span_ce(end_logits.reshape(-1, 2), end_flat)) * 0.5

    if input_truth is None:
        return total_loss

    # ---- cluster branch: host-side span extraction (mirrors np.argwhere glue)
    # TODO(synk): data-dependent host control flow as in the PyTorch reference;
    #             cannot be jitted / put in-kernel, and sizes are tiny, so plain JAX.
    seq_flat = seq_out.reshape(-1, HIDDEN)
    sp = np.argwhere(np.asarray(start_flat) == 1).reshape(-1).tolist()
    ep = np.argwhere(np.asarray(end_flat) == 1).reshape(-1).tolist()
    feats = []
    for i, s in enumerate(sp):
        if i >= len(ep):
            continue
        e = ep[i]
        span = seq_flat[s:e + 1]
        if POOL_MODE == "sum":
            f = jnp.sum(span, axis=0, keepdims=True)
        elif POOL_MODE == "avg":
            f = jnp.mean(span, axis=0, keepdims=True)
        else:  # max
            f = jnp.max(span, axis=0, keepdims=True)
        feats.append(f)
    if len(feats) == 0:
        return total_loss

    features = jnp.concatenate(feats, axis=0)
    # nn.Dropout: identity in eval mode.
    prob = features @ params["cluster_w"] + params["cluster_b"]

    y = input_truth[: prob.shape[0]]
    logp = jax.nn.log_softmax(prob, axis=-1)
    w = cluster_var[y]
    nll = -jnp.take_along_axis(logp, y[:, None], axis=-1)[:, 0]
    ce_cluster = jnp.sum(w * nll) / jnp.sum(w)   # weighted CrossEntropyLoss(cluster_var)

    return total_loss + GAMA * ce_cluster


# ----------------------------- main -------------------------------------------
if __name__ == "__main__":
    key = jax.random.PRNGKey(0)
    pkey, ikey = jax.random.split(key)
    params = init_params(pkey)

    input_ids = jax.random.randint(ikey, (BATCH, SEQ), 0, VOCAB, dtype=jnp.int32)
    token_type_ids = jnp.zeros((BATCH, SEQ), jnp.int32)
    attention_mask = jnp.ones((BATCH, SEQ), jnp.int32)

    start_positions = np.zeros((BATCH, SEQ), np.int32)
    end_positions = np.zeros((BATCH, SEQ), np.int32)
    start_positions[0, 1] = 1; end_positions[0, 2] = 1
    start_positions[1, 3] = 1; end_positions[1, 5] = 1
    start_positions = jnp.asarray(start_positions)
    end_positions = jnp.asarray(end_positions)

    input_truth = jnp.asarray([1, 3, 0, 2], jnp.int32)
    cluster_var = jnp.asarray([1.0, 0.5, 2.0, 1.5], jnp.float32)

    # training branch (span CE + weighted cluster CE)
    loss = forward(params, input_ids, token_type_ids, attention_mask,
                   start_positions, end_positions,
                   input_truth=input_truth, cluster_var=cluster_var)
    loss = jax.block_until_ready(loss)

    # inference branch
    logits = forward(params, input_ids, token_type_ids, attention_mask)
    jax.block_until_ready(logits[0])

    assert np.isfinite(float(loss))
    assert logits[0].shape == (BATCH, SEQ, 2)
    assert logits[2].shape == (BATCH, SEQ, SEQ)
    print("KERNEL_OK")
</pallas_src>

<mosaic_0001>
module attributes {stable_mosaic.version = 11 : i64} {
  func.func @fused_encoder_kernel(%arg0: i32, %arg1: i32, %arg2: memref<1x8x32xf32, #tpu.memory_space<vmem>>, %arg3: memref<1x1x8xf32, #tpu.memory_space<vmem>>, %arg4: memref<1x12x32x8xbf16, #tpu.memory_space<vmem>>, %arg5: memref<1x12x1x8xf32, #tpu.memory_space<vmem>>, %arg6: memref<1x4x8x32xbf16, #tpu.memory_space<vmem>>, %arg7: memref<1x32x64xbf16, #tpu.memory_space<vmem>>, %arg8: memref<1x1x64xf32, #tpu.memory_space<vmem>>, %arg9: memref<1x64x32xbf16, #tpu.memory_space<vmem>>, %arg10: memref<1x6x32xf32, #tpu.memory_space<vmem>>, %arg11: memref<32x128xbf16, #tpu.memory_space<vmem>>, %arg12: memref<1x128xf32, #tpu.memory_space<vmem>>, %arg13: memref<1x8x32xf32, #tpu.memory_space<vmem>>, %arg14: memref<1x8x128xf32, #tpu.memory_space<vmem>>, %arg15: memref<8x32xf32, #tpu.memory_space<vmem>>) attributes {dimension_semantics = [#tpu.dimension_semantics<parallel>, #tpu.dimension_semantics<arbitrary>], iteration_bounds = array<i64: 2, 2>, scalar_prefetch = 0 : i64, scratch_operands = 1 : i64, tpu.core_type = #tpu.core_type<tc>, window_params = [{transform_indices = @transform_0, window_bounds = array<i64: 1, 8, 32>}, {transform_indices = @transform_1, window_bounds = array<i64: 1, 1, 8>}, {transform_indices = @transform_2, window_bounds = array<i64: 1, 12, 32, 8>}, {transform_indices = @transform_3, window_bounds = array<i64: 1, 12, 1, 8>}, {transform_indices = @transform_4, window_bounds = array<i64: 1, 4, 8, 32>}, {transform_indices = @transform_5, window_bounds = array<i64: 1, 32, 64>}, {transform_indices = @transform_6, window_bounds = array<i64: 1, 1, 64>}, {transform_indices = @transform_7, window_bounds = array<i64: 1, 64, 32>}, {transform_indices = @transform_8, window_bounds = array<i64: 1, 6, 32>}, {pipeline_mode = #tpu.pipeline_mode<synchronous>, transform_indices = @transform_9, window_bounds = array<i64: 32, 128>}, {pipeline_mode = #tpu.pipeline_mode<synchronous>, transform_indices = @transform_10, window_bounds = array<i64: 1, 128>}, {transform_indices = @transform_11, window_bounds = array<i64: 1, 8, 32>}, {transform_indices = @transform_12, window_bounds = array<i64: 1, 8, 128>}]} {
    %c0_i32 = arith.constant 0 : i32
    %0 = arith.cmpi eq, %arg1, %c0_i32 : i32
    %1 = arith.extui %0 : i1 to i32
    %c0_i32_0 = arith.constant 0 : i32
    %2 = arith.cmpi ne, %1, %c0_i32_0 : i32
    scf.if %2 {
      %c0_169 = arith.constant 0 : index
      %c0_170 = arith.constant 0 : index
      %c0_171 = arith.constant 0 : index
      %269 = vector.load %arg2[%c0_169, %c0_170, %c0_171] : memref<1x8x32xf32, #tpu.memory_space<vmem>>, vector<1x8x32xf32>
      %270 = vector.shape_cast %269 : vector<1x8x32xf32> to vector<8x32xf32>
      %c0_172 = arith.constant 0 : index
      %c0_173 = arith.constant 0 : index
      %271 = vector.load %arg15[%c0_172, %c0_173] : memref<8x32xf32, #tpu.memory_space<vmem>>, vector<8x32xf32>
      tpu.vector_store %arg15[%c0_172, %c0_173], %270 {strides = array<i32>} : memref<8x32xf32, #tpu.memory_space<vmem>>, vector<8x32xf32>,
    } else {
    }
    %c0 = arith.constant 0 : index
    %c0_1 = arith.constant 0 : index
    %3 = vector.load %arg15[%c0, %c0_1] : memref<8x32xf32, #tpu.memory_space<vmem>>, vector<8x32xf32>
    %4 = arith.truncf %3 : vector<8x32xf32> to vector<8x32xbf16>
    %c0_2 = arith.constant 0 : index
    %c0_3 = arith.constant 0 : index
    %c0_4 = arith.constant 0 : index
    %5 = vector.load %arg3[%c0_2, %c0_3, %c0_4] : memref<1x1x8xf32, #tpu.memory_space<vmem>>, vector<1x1x8xf32>
    %6 = vector.shape_cast %5 : vector<1x1x8xf32> to vector<1x8xf32>
    %7 = vector.shape_cast %6 : vector<1x8xf32> to vector<1x8xf32>
    %8 = vector.broadcast %7 : vector<1x8xf32> to vector<8x8xf32>
    %c0_5 = arith.constant 0 : index
    %c0_6 = arith.constant 0 : index
    %c0_7 = arith.constant 0 : index
    %9 = vector.load %arg10[%c0_5, %c0_6, %c0_7] : memref<1x6x32xf32, #tpu.memory_space<vmem>>, vector<1x6x32xf32>
    %10 = vector.shape_cast %9 : vector<1x6x32xf32> to vector<6x32xf32>
    %11 = vector.extract_strided_slice %10 {offsets = [0, 0], sizes = [1, 32], strides = [1, 1]} : vector<6x32xf32> to vector<1x32xf32>
    %12 = vector.extract_strided_slice %10 {offsets = [1, 0], sizes = [1, 32], strides = [1, 1]} : vector<6x32xf32> to vector<1x32xf32>
    %13 = vector.extract_strided_slice %10 {offsets = [2, 0], sizes = [1, 32], strides = [1, 1]} : vector<6x32xf32> to vector<1x32xf32>
    %14 = vector.extract_strided_slice %10 {offsets = [3, 0], sizes = [1, 32], strides = [1, 1]} : vector<6x32xf32> to vector<1x32xf32>
    %15 = vector.extract_strided_slice %10 {offsets = [4, 0], sizes = [1, 32], strides = [1, 1]} : vector<6x32xf32> to vector<1x32xf32>
    %16 = vector.extract_strided_slice %10 {offsets = [5, 0], sizes = [1, 32], strides = [1, 1]} : vector<6x32xf32> to vector<1x32xf32>
    %cst = arith.constant 0.000000e+00 : f32
    %17 = vector.broadcast %cst : f32 to vector<8x32xf32>
    %c0_8 = arith.constant 0 : index
    %c0_9 = arith.constant 0 : index
    %c0_10 = arith.constant 0 : index
    %c0_11 = arith.constant 0 : index
    %18 = vector.load %arg4[%c0_8, %c0_9, %c0_10, %c0_11] : memref<1x12x32x8xbf16, #tpu.memory_space<vmem>>, vector<1x1x32x8xbf16>
    %19 = vector.shape_cast %18 : vector<1x1x32x8xbf16> to vector<32x8xbf16>
    %c0_12 = arith.constant 0 : index
    %c4 = arith.constant 4 : index
    %c0_13 = arith.constant 0 : index
    %c0_14 = arith.constant 0 : index
    %20 = vector.load %arg4[%c0_12, %c4, %c0_13, %c0_14] : memref<1x12x32x8xbf16, #tpu.memory_space<vmem>>, vector<1x1x32x8xbf16>
    %21 = vector.shape_cast %20 : vector<1x1x32x8xbf16> to vector<32x8xbf16>
    %c0_15 = arith.constant 0 : index
    %c8 = arith.constant 8 : index
    %c0_16 = arith.constant 0 : index
    %c0_17 = arith.constant 0 : index
    %22 = vector.load %arg4[%c0_15, %c8, %c0_16, %c0_17] : memref<1x12x32x8xbf16, #tpu.memory_space<vmem>>, vector<1x1x32x8xbf16>
    %23 = vector.shape_cast %22 : vector<1x1x32x8xbf16> to vector<32x8xbf16>
    %cst_18 = arith.constant dense<0.000000e+00> : vector<8x8xf32>
    %24 = tpu.matmul %4, %19, %cst_18 {dimension_numbers = #tpu.dot_dimension_numbers<[1], [0], [0], [1], [0, 0, 1, 1], [], []>} : vector<8x32xbf16>, vector<32x8xbf16>, vector<8x8xf32> -> vector<8x8xf32>
    %c0_19 = arith.constant 0 : index
    %c0_20 = arith.constant 0 : index
    %c0_21 = arith.constant 0 : index
    %c0_22 = arith.constant 0 : index
    %25 = vector.load %arg5[%c0_19, %c0_20, %c0_21, %c0_22] : memref<1x12x1x8xf32, #tpu.memory_space<vmem>>, vector<1x1x1x8xf32>
    %26 = vector.shape_cast %25 : vector<1x1x1x8xf32> to vector<1x8xf32>
    %27 = vector.broadcast %26 : vector<1x8xf32> to vector<8x8xf32>
    %28 = arith.addf %24, %27 : vector<8x8xf32>
    %29 = arith.truncf %28 : vector<8x8xf32> to vector<8x8xbf16>
    %cst_23 = arith.constant dense<0.000000e+00> : vector<8x8xf32>
    %30 = tpu.matmul %4, %21, %cst_23 {dimension_numbers = #tpu.dot_dimension_numbers<[1], [0], [0], [1], [0, 0, 1, 1], [], []>} : vector<8x32xbf16>, vector<32x8xbf16>, vector<8x8xf32> -> vector<8x8xf32>
    %c0_24 = arith.constant 0 : index
    %c4_25 = arith.constant 4 : index
    %c0_26 = arith.constant 0 : index
    %c0_27 = arith.constant 0 : index
    %31 = vector.load %arg5[%c0_24, %c4_25, %c0_26, %c0_27] : memref<1x12x1x8xf32, #tpu.memory_space<vmem>>, vector<1x1x1x8xf32>
    %32 = vector.shape_cast %31 : vector<1x1x1x8xf32> to vector<1x8xf32>
    %33 = vector.broadcast %32 : vector<1x8xf32> to vector<8x8xf32>
    %34 = arith.addf %30, %33 : vector<8x8xf32>
    %35 = arith.truncf %34 : vector<8x8xf32> to vector<8x8xbf16>
    %cst_28 = arith.constant dense<0.000000e+00> : vector<8x8xf32>
    %36 = tpu.matmul %4, %23, %cst_28 {dimension_numbers = #tpu.dot_dimension_numbers<[1], [0], [0], [1], [0, 0, 1, 1], [], []>} : vector<8x32xbf16>, vector<32x8xbf16>, vector<8x8xf32> -> vector<8x8xf32>
    %c0_29 = arith.constant 0 : index
    %c8_30 = arith.constant 8 : index
    %c0_31 = arith.constant 0 : index
    %c0_32 = arith.constant 0 : index
    %37 = vector.load %arg5[%c0_29, %c8_30, %c0_31, %c0_32] : memref<1x12x1x8xf32, #tpu.memory_space<vmem>>, vector<1x1x1x8xf32>
    %38 = vector.shape_cast %37 : vector<1x1x1x8xf32> to vector<1x8xf32>
    %39 = vector.broadcast %38 : vector<1x8xf32> to vector<8x8xf32>
    %40 = arith.addf %36, %39 : vector<8x8xf32>
    %41 = arith.truncf %40 : vector<8x8xf32> to vector<8x8xbf16>
    %cst_33 = arith.constant dense<0.000000e+00> : vector<8x8xf32>
    %42 = tpu.matmul %29, %35, %cst_33 {dimension_numbers = #tpu.dot_dimension_numbers<[1], [1], [0], [0], [0, 0, 1, 0], [], []>} : vector<8x8xbf16>, vector<8x8xbf16>, vector<8x8xf32> -> vector<8x8xf32>
    %43 = arith.addf %42, %8 : vector<8x8xf32>
    %cst_34 = arith.constant dense<0xFF800000> : vector<8xf32>
    %44 = vector.multi_reduction <maximumf>, %43, %cst_34 [1] : vector<8x8xf32> to vector<8xf32>
    %45 = vector.shape_cast %44 : vector<8xf32> to vector<8x1xf32>
    %46 = vector.broadcast %45 : vector<8x1xf32> to vector<8x8xf32>
    %47 = arith.subf %43, %46 : vector<8x8xf32>
    %48 = math.exp %47 : vector<8x8xf32>
    %cst_35 = arith.constant dense<0.000000e+00> : vector<8xf32>
    %49 = vector.multi_reduction <add>, %48, %cst_35 [1] : vector<8x8xf32> to vector<8xf32>
    %50 = vector.shape_cast %49 : vector<8xf32> to vector<8x1xf32>
    %51 = tpu.reciprocal %50 {approx = true} : vector<8x1xf32> -> vector<8x1xf32>
    %52 = vector.broadcast %51 : vector<8x1xf32> to vector<8x8xf32>
    %53 = arith.mulf %48, %52 : vector<8x8xf32>
    %54 = arith.truncf %53 : vector<8x8xf32> to vector<8x8xbf16>
    %cst_36 = arith.constant dense<0.000000e+00> : vector<8x8xf32>
    %55 = tpu.matmul %54, %41, %cst_36 {dimension_numbers = #tpu.dot_dimension_numbers<[1], [0], [0], [1], [0, 0, 1, 1], [], []>} : vector<8x8xbf16>, vector<8x8xbf16>, vector<8x8xf32> -> vector<8x8xf32>
    %56 = arith.truncf %55 : vector<8x8xf32> to vector<8x8xbf16>
    %c0_37 = arith.constant 0 : index
    %c0_38 = arith.constant 0 : index
    %c0_39 = arith.constant 0 : index
    %c0_40 = arith.constant 0 : index
    %57 = vector.load %arg6[%c0_37, %c0_38, %c0_39, %c0_40] : memref<1x4x8x32xbf16, #tpu.memory_space<vmem>>, vector<1x1x8x32xbf16>
    %58 = vector.shape_cast %57 : vector<1x1x8x32xbf16> to vector<8x32xbf16>
    %cst_41 = arith.constant dense<0.000000e+00> : vector<8x32xf32>
    %59 = tpu.matmul %56, %58, %cst_41 {dimension_numbers = #tpu.dot_dimension_numbers<[1], [0], [0], [1], [0, 0, 1, 1], [], []>} : vector<8x8xbf16>, vector<8x32xbf16>, vector<8x32xf32> -> vector<8x32xf32>
    %60 = arith.addf %17, %59 : vector<8x32xf32>
    %c0_42 = arith.constant 0 : index
    %c1 = arith.constant 1 : index
    %c0_43 = arith.constant 0 : index
    %c0_44 = arith.constant 0 : index
    %61 = vector.load %arg4[%c0_42, %c1, %c0_43, %c0_44] : memref<1x12x32x8xbf16, #tpu.memory_space<vmem>>, vector<1x1x32x8xbf16>
    %62 = vector.shape_cast %61 : vector<1x1x32x8xbf16> to vector<32x8xbf16>
    %c0_45 = arith.constant 0 : index
    %c5 = arith.constant 5 : index
    %c0_46 = arith.constant 0 : index
    %c0_47 = arith.constant 0 : index
    %63 = vector.load %arg4[%c0_45, %c5, %c0_46, %c0_47] : memref<1x12x32x8xbf16, #tpu.memory_space<vmem>>, vector<1x1x32x8xbf16>
    %64 = vector.shape_cast %63 : vector<1x1x32x8xbf16> to vector<32x8xbf16>
    %c0_48 = arith.constant 0 : index
    %c9 = arith.constant 9 : index
    %c0_49 = arith.constant 0 : index
    %c0_50 = arith.constant 0 : index
    %65 = vector.load %arg4[%c0_48, %c9, %c0_49, %c0_50] : memref<1x12x32x8xbf16, #tpu.memory_space<vmem>>, vector<1x1x32x8xbf16>
    %66 = vector.shape_cast %65 : vector<1x1x32x8xbf16> to vector<32x8xbf16>
    %cst_51 = arith.constant dense<0.000000e+00> : vector<8x8xf32>
    %67 = tpu.matmul %4, %62, %cst_51 {dimension_numbers = #tpu.dot_dimension_numbers<[1], [0], [0], [1], [0, 0, 1, 1], [], []>} : vector<8x32xbf16>, vector<32x8xbf16>, vector<8x8xf32> -> vector<8x8xf32>
    %c0_52 = arith.constant 0 : index
    %c1_53 = arith.constant 1 : index
    %c0_54 = arith.constant 0 : index
    %c0_55 = arith.constant 0 : index
    %68 = vector.load %arg5[%c0_52, %c1_53, %c0_54, %c0_55] : memref<1x12x1x8xf32, #tpu.memory_space<vmem>>, vector<1x1x1x8xf32>
    %69 = vector.shape_cast %68 : vector<1x1x1x8xf32> to vector<1x8xf32>
    %70 = vector.broadcast %69 : vector<1x8xf32> to vector<8x8xf32>
    %71 = arith.addf %67, %70 : vector<8x8xf32>
    %72 = arith.truncf %71 : vector<8x8xf32> to vector<8x8xbf16>
    %cst_56 = arith.constant dense<0.000000e+00> : vector<8x8xf32>
    %73 = tpu.matmul %4, %64, %cst_56 {dimension_numbers = #tpu.dot_dimension_numbers<[1], [0], [0], [1], [0, 0, 1, 1], [], []>} : vector<8x32xbf16>, vector<32x8xbf16>, vector<8x8xf32> -> vector<8x8xf32>
    %c0_57 = arith.constant 0 : index
    %c5_58 = arith.constant 5 : index
    %c0_59 = arith.constant 0 : index
    %c0_60 = arith.constant 0 : index
    %74 = vector.load %arg5[%c0_57, %c5_58, %c0_59, %c0_60] : memref<1x12x1x8xf32, #tpu.memory_space<vmem>>, vector<1x1x1x8xf32>
    %75 = vector.shape_cast %74 : vector<1x1x1x8xf32> to vector<1x8xf32>
    %76 = vector.broadcast %75 : vector<1x8xf32> to vector<8x8xf32>
    %77 = arith.addf %73, %76 : vector<8x8xf32>
    %78 = arith.truncf %77 : vector<8x8xf32> to vector<8x8xbf16>
    %cst_61 = arith.constant dense<0.000000e+00> : vector<8x8xf32>
    %79 = tpu.matmul %4, %66, %cst_61 {dimension_numbers = #tpu.dot_dimension_numbers<[1], [0], [0], [1], [0, 0, 1, 1], [], []>} : vector<8x32xbf16>, vector<32x8xbf16>, vector<8x8xf32> -> vector<8x8xf32>
    %c0_62 = arith.constant 0 : index
    %c9_63 = arith.constant 9 : index
    %c0_64 = arith.constant 0 : index
    %c0_65 = arith.constant 0 : index
    %80 = vector.load %arg5[%c0_62, %c9_63, %c0_64, %c0_65] : memref<1x12x1x8xf32, #tpu.memory_space<vmem>>, vector<1x1x1x8xf32>
    %81 = vector.shape_cast %80 : vector<1x1x1x8xf32> to vector<1x8xf32>
    %82 = vector.broadcast %81 : vector<1x8xf32> to vector<8x8xf32>
    %83 = arith.addf %79, %82 : vector<8x8xf32>
    %84 = arith.truncf %83 : vector<8x8xf32> to vector<8x8xbf16>
    %cst_66 = arith.constant dense<0.000000e+00> : vector<8x8xf32>
    %85 = tpu.matmul %72, %78, %cst_66 {dimension_numbers = #tpu.dot_dimension_numbers<[1], [1], [0], [0], [0, 0, 1, 0], [], []>} : vector<8x8xbf16>, vector<8x8xbf16>, vector<8x8xf32> -> vector<8x8xf32>
    %86 = arith.addf %85, %8 : vector<8x8xf32>
    %cst_67 = arith.constant dense<0xFF800000> : vector<8xf32>
    %87 = vector.multi_reduction <maximumf>, %86, %cst_67 [1] : vector<8x8xf32> to vector<8xf32>
    %88 = vector.shape_cast %87 : vector<8xf32> to vector<8x1xf32>
    %89 = vector.broadcast %88 : vector<8x1xf32> to vector<8x8xf32>
    %90 = arith.subf %86, %89 : vector<8x8xf32>
    %91 = math.exp %90 : vector<8x8xf32>
    %cst_68 = arith.constant dense<0.000000e+00> : vector<8xf32>
    %92 = vector.multi_reduction <add>, %91, %cst_68 [1] : vector<8x8xf32> to vector<8xf32>
    %93 = vector.shape_cast %92 : vector<8xf32> to vector<8x1xf32>
    %94 = tpu.reciprocal %93 {approx = true} : vector<8x1xf32> -> vector<8x1xf32>
    %95 = vector.broadcast %94 : vector<8x1xf32> to vector<8x8xf32>
    %96 = arith.mulf %91, %95 : vector<8x8xf32>
    %97 = arith.truncf %96 : vector<8x8xf32> to vector<8x8xbf16>
    %cst_69 = arith.constant dense<0.000000e+00> : vector<8x8xf32>
    %98 = tpu.matmul %97, %84, %cst_69 {dimension_numbers = #tpu.dot_dimension_numbers<[1], [0], [0], [1], [0, 0, 1, 1], [], []>} : vector<8x8xbf16>, vector<8x8xbf16>, vector<8x8xf32> -> vector<8x8xf32>
    %99 = arith.truncf %98 : vector<8x8xf32> to vector<8x8xbf16>
    %c0_70 = arith.constant 0 : index
    %c1_71 = arith.constant 1 : index
    %c0_72 = arith.constant 0 : index
    %c0_73 = arith.constant 0 : index
    %100 = vector.load %arg6[%c0_70, %c1_71, %c0_72, %c0_73] : memref<1x4x8x32xbf16, #tpu.memory_space<vmem>>, vector<1x1x8x32xbf16>
    %101 = vector.shape_cast %100 : vector<1x1x8x32xbf16> to vector<8x32xbf16>
    %cst_74 = arith.constant dense<0.000000e+00> : vector<8x32xf32>
    %102 = tpu.matmul %99, %101, %cst_74 {dimension_numbers = #tpu.dot_dimension_numbers<[1], [0], [0], [1], [0, 0, 1, 1], [], []>} : vector<8x8xbf16>, vector<8x32xbf16>, vector<8x32xf32> -> vector<8x32xf32>
    %103 = arith.addf %60, %102 : vector<8x32xf32>
    %c0_75 = arith.constant 0 : index
    %c2 = arith.constant 2 : index
    %c0_76 = arith.constant 0 : index
    %c0_77 = arith.constant 0 : index
    %104 = vector.load %arg4[%c0_75, %c2, %c0_76, %c0_77] : memref<1x12x32x8xbf16, #tpu.memory_space<vmem>>, vector<1x1x32x8xbf16>
    %105 = vector.shape_cast %104 : vector<1x1x32x8xbf16> to vector<32x8xbf16>
    %c0_78 = arith.constant 0 : index
    %c6 = arith.constant 6 : index
    %c0_79 = arith.constant 0 : index
    %c0_80 = arith.constant 0 : index
    %106 = vector.load %arg4[%c0_78, %c6, %c0_79, %c0_80] : memref<1x12x32x8xbf16, #tpu.memory_space<vmem>>, vector<1x1x32x8xbf16>
    %107 = vector.shape_cast %106 : vector<1x1x32x8xbf16> to vector<32x8xbf16>
    %c0_81 = arith.constant 0 : index
    %c10 = arith.constant 10 : index
    %c0_82 = arith.constant 0 : index
    %c0_83 = arith.constant 0 : index
    %108 = vector.load %arg4[%c0_81, %c10, %c0_82, %c0_83] : memref<1x12x32x8xbf16, #tpu.memory_space<vmem>>, vector<1x1x32x8xbf16>
    %109 = vector.shape_cast %108 : vector<1x1x32x8xbf16> to vector<32x8xbf16>
    %cst_84 = arith.constant dense<0.000000e+00> : vector<8x8xf32>
    %110 = tpu.matmul %4, %105, %cst_84 {dimension_numbers = #tpu.dot_dimension_numbers<[1], [0], [0], [1], [0, 0, 1, 1], [], []>} : vector<8x32xbf16>, vector<32x8xbf16>, vector<8x8xf32> -> vector<8x8xf32>
    %c0_85 = arith.constant 0 : index
    %c2_86 = arith.constant 2 : index
    %c0_87 = arith.constant 0 : index
    %c0_88 = arith.constant 0 : index
    %111 = vector.load %arg5[%c0_85, %c2_86, %c0_87, %c0_88] : memref<1x12x1x8xf32, #tpu.memory_space<vmem>>, vector<1x1x1x8xf32>
    %112 = vector.shape_cast %111 : vector<1x1x1x8xf32> to vector<1x8xf32>
    %113 = vector.broadcast %112 : vector<1x8xf32> to vector<8x8xf32>
    %114 = arith.addf %110, %113 : vector<8x8xf32>
    %115 = arith.truncf %114 : vector<8x8xf32> to vector<8x8xbf16>
    %cst_89 = arith.constant dense<0.000000e+00> : vector<8x8xf32>
    %116 = tpu.matmul %4, %107, %cst_89 {dimension_numbers = #tpu.dot_dimension_numbers<[1], [0], [0], [1], [0, 0, 1, 1], [], []>} : vector<8x32xbf16>, vector<32x8xbf16>, vector<8x8xf32> -> vector<8x8xf32>
    %c0_90 = arith.constant 0 : index
    %c6_91 = arith.constant 6 : index
    %c0_92 = arith.constant 0 : index
    %c0_93 = arith.constant 0 : index
    %117 = vector.load %arg5[%c0_90, %c6_91, %c0_92, %c0_93] : memref<1x12x1x8xf32, #tpu.memory_space<vmem>>, vector<1x1x1x8xf32>
    %118 = vector.shape_cast %117 : vector<1x1x1x8xf32> to vector<1x8xf32>
    %119 = vector.broadcast %118 : vector<1x8xf32> to vector<8x8xf32>
    %120 = arith.addf %116, %119 : vector<8x8xf32>
    %121 = arith.truncf %120 : vector<8x8xf32> to vector<8x8xbf16>
    %cst_94 = arith.constant dense<0.000000e+00> : vector<8x8xf32>
    %122 = tpu.matmul %4, %109, %cst_94 {dimension_numbers = #tpu.dot_dimension_numbers<[1], [0], [0], [1], [0, 0, 1, 1], [], []>} : vector<8x32xbf16>, vector<32x8xbf16>, vector<8x8xf32> -> vector<8x8xf32>
    %c0_95 = arith.constant 0 : index
    %c10_96 = arith.constant 10 : index
    %c0_97 = arith.constant 0 : index
    %c0_98 = arith.constant 0 : index
    %123 = vector.load %arg5[%c0_95, %c10_96, %c0_97, %c0_98] : memref<1x12x1x8xf32, #tpu.memory_space<vmem>>, vector<1x1x1x8xf32>
    %124 = vector.shape_cast %123 : vector<1x1x1x8xf32> to vector<1x8xf32>
    %125 = vector.broadcast %124 : vector<1x8xf32> to vector<8x8xf32>
    %126 = arith.addf %122, %125 : vector<8x8xf32>
    %127 = arith.truncf %126 : vector<8x8xf32> to vector<8x8xbf16>
    %cst_99 = arith.constant dense<0.000000e+00> : vector<8x8xf32>
    %128 = tpu.matmul %115, %121, %cst_99 {dimension_numbers = #tpu.dot_dimension_numbers<[1], [1], [0], [0], [0, 0, 1, 0], [], []>} : vector<8x8xbf16>, vector<8x8xbf16>, vector<8x8xf32> -> vector<8x8xf32>
    %129 = arith.addf %128, %8 : vector<8x8xf32>
    %cst_100 = arith.constant dense<0xFF800000> : vector<8xf32>
    %130 = vector.multi_reduction <maximumf>, %129, %cst_100 [1] : vector<8x8xf32> to vector<8xf32>
    %131 = vector.shape_cast %130 : vector<8xf32> to vector<8x1xf32>
    %132 = vector.broadcast %131 : vector<8x1xf32> to vector<8x8xf32>
    %133 = arith.subf %129, %132 : vector<8x8xf32>
    %134 = math.exp %133 : vector<8x8xf32>
    %cst_101 = arith.constant dense<0.000000e+00> : vector<8xf32>
    %135 = vector.multi_reduction <add>, %134, %cst_101 [1] : vector<8x8xf32> to vector<8xf32>
    %136 = vector.shape_cast %135 : vector<8xf32> to vector<8x1xf32>
    %137 = tpu.reciprocal %136 {approx = true} : vector<8x1xf32> -> vector<8x1xf32>
    %138 = vector.broadcast %137 : vector<8x1xf32> to vector<8x8xf32>
    %139 = arith.mulf %134, %138 : vector<8x8xf32>
    %140 = arith.truncf %139 : vector<8x8xf32> to vector<8x8xbf16>
    %cst_102 = arith.constant dense<0.000000e+00> : vector<8x8xf32>
    %141 = tpu.matmul %140, %127, %cst_102 {dimension_numbers = #tpu.dot_dimension_numbers<[1], [0], [0], [1], [0, 0, 1, 1], [], []>} : vector<8x8xbf16>, vector<8x8xbf16>, vector<8x8xf32> -> vector<8x8xf32>
    %142 = arith.truncf %141 : vector<8x8xf32> to vector<8x8xbf16>
    %c0_103 = arith.constant 0 : index
    %c2_104 = arith.constant 2 : index
    %c0_105 = arith.constant 0 : index
    %c0_106 = arith.constant 0 : index
    %143 = vector.load %arg6[%c0_103, %c2_104, %c0_105, %c0_106] : memref<1x4x8x32xbf16, #tpu.memory_space<vmem>>, vector<1x1x8x32xbf16>
    %144 = vector.shape_cast %143 : vector<1x1x8x32xbf16> to vector<8x32xbf16>
    %cst_107 = arith.constant dense<0.000000e+00> : vector<8x32xf32>
    %145 = tpu.matmul %142, %144, %cst_107 {dimension_numbers = #tpu.dot_dimension_numbers<[1], [0], [0], [1], [0, 0, 1, 1], [], []>} : vector<8x8xbf16>, vector<8x32xbf16>, vector<8x32xf32> -> vector<8x32xf32>
    %146 = arith.addf %103, %145 : vector<8x32xf32>
    %c0_108 = arith.constant 0 : index
    %c3 = arith.constant 3 : index
    %c0_109 = arith.constant 0 : index
    %c0_110 = arith.constant 0 : index
    %147 = vector.load %arg4[%c0_108, %c3, %c0_109, %c0_110] : memref<1x12x32x8xbf16, #tpu.memory_space<vmem>>, vector<1x1x32x8xbf16>
    %148 = vector.shape_cast %147 : vector<1x1x32x8xbf16> to vector<32x8xbf16>
    %c0_111 = arith.constant 0 : index
    %c7 = arith.constant 7 : index
    %c0_112 = arith.constant 0 : index
    %c0_113 = arith.constant 0 : index
    %149 = vector.load %arg4[%c0_111, %c7, %c0_112, %c0_113] : memref<1x12x32x8xbf16, #tpu.memory_space<vmem>>, vector<1x1x32x8xbf16>
    %150 = vector.shape_cast %149 : vector<1x1x32x8xbf16> to vector<32x8xbf16>
    %c0_114 = arith.constant 0 : index
    %c11 = arith.constant 11 : index
    %c0_115 = arith.constant 0 : index
    %c0_116 = arith.constant 0 : index
    %151 = vector.load %arg4[%c0_114, %c11, %c0_115, %c0_116] : memref<1x12x32x8xbf16, #tpu.memory_space<vmem>>, vector<1x1x32x8xbf16>
    %152 = vector.shape_cast %151 : vector<1x1x32x8xbf16> to vector<32x8xbf16>
    %cst_117 = arith.constant dense<0.000000e+00> : vector<8x8xf32>
    %153 = tpu.matmul %4, %148, %cst_117 {dimension_numbers = #tpu.dot_dimension_numbers<[1], [0], [0], [1], [0, 0, 1, 1], [], []>} : vector<8x32xbf16>, vector<32x8xbf16>, vector<8x8xf32> -> vector<8x8xf32>
    %c0_118 = arith.constant 0 : index
    %c3_119 = arith.constant 3 : index
    %c0_120 = arith.constant 0 : index
    %c0_121 = arith.constant 0 : index
    %154 = vector.load %arg5[%c0_118, %c3_119, %c0_120, %c0_121] : memref<1x12x1x8xf32, #tpu.memory_space<vmem>>, vector<1x1x1x8xf32>
    %155 = vector.shape_cast %154 : vector<1x1x1x8xf32> to vector<1x8xf32>
    %156 = vector.broadcast %155 : vector<1x8xf32> to vector<8x8xf32>
    %157 = arith.addf %153, %156 : vector<8x8xf32>
    %158 = arith.truncf %157 : vector<8x8xf32> to vector<8x8xbf16>
    %cst_122 = arith.constant dense<0.000000e+00> : vector<8x8xf32>
    %159 = tpu.matmul %4, %150, %cst_122 {dimension_numbers = #tpu.dot_dimension_numbers<[1], [0], [0], [1], [0, 0, 1, 1], [], []>} : vector<8x32xbf16>, vector<32x8xbf16>, vector<8x8xf32> -> vector<8x8xf32>
    %c0_123 = arith.constant 0 : index
    %c7_124 = arith.constant 7 : index
    %c0_125 = arith.constant 0 : index
    %c0_126 = arith.constant 0 : index
    %160 = vector.load %arg5[%c0_123, %c7_124, %c0_125, %c0_126] : memref<1x12x1x8xf32, #tpu.memory_space<vmem>>, vector<1x1x1x8xf32>
    %161 = vector.shape_cast %160 : vector<1x1x1x8xf32> to vector<1x8xf32>
    %162 = vector.broadcast %161 : vector<1x8xf32> to vector<8x8xf32>
    %163 = arith.addf %159, %162 : vector<8x8xf32>
    %164 = arith.truncf %163 : vector<8x8xf32> to vector<8x8xbf16>
    %cst_127 = arith.constant dense<0.000000e+00> : vector<8x8xf32>
    %165 = tpu.matmul %4, %152, %cst_127 {dimension_numbers = #tpu.dot_dimension_numbers<[1], [0], [0], [1], [0, 0, 1, 1], [], []>} : vector<8x32xbf16>, vector<32x8xbf16>, vector<8x8xf32> -> vector<8x8xf32>
    %c0_128 = arith.constant 0 : index
    %c11_129 = arith.constant 11 : index
    %c0_130 = arith.constant 0 : index
    %c0_131 = arith.constant 0 : index
    %166 = vector.load %arg5[%c0_128, %c11_129, %c0_130, %c0_131] : memref<1x12x1x8xf32, #tpu.memory_space<vmem>>, vector<1x1x1x8xf32>
    %167 = vector.shape_cast %166 : vector<1x1x1x8xf32> to vector<1x8xf32>
    %168 = vector.broadcast %167 : vector<1x8xf32> to vector<8x8xf32>
    %169 = arith.addf %165, %168 : vector<8x8xf32>
    %170 = arith.truncf %169 : vector<8x8xf32> to vector<8x8xbf16>
    %cst_132 = arith.constant dense<0.000000e+00> : vector<8x8xf32>
    %171 = tpu.matmul %158, %164, %cst_132 {dimension_numbers = #tpu.dot_dimension_numbers<[1], [1], [0], [0], [0, 0, 1, 0], [], []>} : vector<8x8xbf16>, vector<8x8xbf16>, vector<8x8xf32> -> vector<8x8xf32>
    %172 = arith.addf %171, %8 : vector<8x8xf32>
    %cst_133 = arith.constant dense<0xFF800000> : vector<8xf32>
    %173 = vector.multi_reduction <maximumf>, %172, %cst_133 [1] : vector<8x8xf32> to vector<8xf32>
    %174 = vector.shape_cast %173 : vector<8xf32> to vector<8x1xf32>
    %175 = vector.broadcast %174 : vector<8x1xf32> to vector<8x8xf32>
    %176 = arith.subf %172, %175 : vector<8x8xf32>
    %177 = math.exp %176 : vector<8x8xf32>
    %cst_134 = arith.constant dense<0.000000e+00> : vector<8xf32>
    %178 = vector.multi_reduction <add>, %177, %cst_134 [1] : vector<8x8xf32> to vector<8xf32>
    %179 = vector.shape_cast %178 : vector<8xf32> to vector<8x1xf32>
    %180 = tpu.reciprocal %179 {approx = true} : vector<8x1xf32> -> vector<8x1xf32>
    %181 = vector.broadcast %180 : vector<8x1xf32> to vector<8x8xf32>
    %182 = arith.mulf %177, %181 : vector<8x8xf32>
    %183 = arith.truncf %182 : vector<8x8xf32> to vector<8x8xbf16>
    %cst_135 = arith.constant dense<0.000000e+00> : vector<8x8xf32>
    %184 = tpu.matmul %183, %170, %cst_135 {dimension_numbers = #tpu.dot_dimension_numbers<[1], [0], [0], [1], [0, 0, 1, 1], [], []>} : vector<8x8xbf16>, vector<8x8xbf16>, vector<8x8xf32> -> vector<8x8xf32>
    %185 = arith.truncf %184 : vector<8x8xf32> to vector<8x8xbf16>
    %c0_136 = arith.constant 0 : index
    %c3_137 = arith.constant 3 : index
    %c0_138 = arith.constant 0 : index
    %c0_139 = arith.constant 0 : index
    %186 = vector.load %arg6[%c0_136, %c3_137, %c0_138, %c0_139] : memref<1x4x8x32xbf16, #tpu.memory_space<vmem>>, vector<1x1x8x32xbf16>
    %187 = vector.shape_cast %186 : vector<1x1x8x32xbf16> to vector<8x32xbf16>
    %cst_140 = arith.constant dense<0.000000e+00> : vector<8x32xf32>
    %188 = tpu.matmul %185, %187, %cst_140 {dimension_numbers = #tpu.dot_dimension_numbers<[1], [0], [0], [1], [0, 0, 1, 1], [], []>} : vector<8x8xbf16>, vector<8x32xbf16>, vector<8x32xf32> -> vector<8x32xf32>
    %189 = arith.addf %146, %188 : vector<8x32xf32>
    %190 = vector.broadcast %11 : vector<1x32xf32> to vector<8x32xf32>
    %191 = arith.addf %189, %190 : vector<8x32xf32>
    %192 = arith.addf %3, %191 : vector<8x32xf32>
    %cst_141 = arith.constant dense<0.000000e+00> : vector<8xf32>
    %193 = vector.multi_reduction <add>, %192, %cst_141 [1] : vector<8x32xf32> to vector<8xf32>
    %194 = vector.shape_cast %193 : vector<8xf32> to vector<8x1xf32>
    %cst_142 = arith.constant 3.200000e+01 : f32
    %195 = vector.broadcast %cst_142 : f32 to vector<8x1xf32>
    %196 = arith.divf %194, %195 : vector<8x1xf32>
    %197 = vector.broadcast %196 : vector<8x1xf32> to vector<8x32xf32>
    %198 = arith.subf %192, %197 : vector<8x32xf32>
    %199 = arith.mulf %198, %198 : vector<8x32xf32>
    %cst_143 = arith.constant dense<0.000000e+00> : vector<8xf32>
    %200 = vector.multi_reduction <add>, %199, %cst_143 [1] : vector<8x32xf32> to vector<8xf32>
    %201 = vector.shape_cast %200 : vector<8xf32> to vector<8x1xf32>
    %cst_144 = arith.constant 3.200000e+01 : f32
    %202 = vector.broadcast %cst_144 : f32 to vector<8x1xf32>
    %203 = arith.divf %201, %202 : vector<8x1xf32>
    %204 = vector.broadcast %196 : vector<8x1xf32> to vector<8x32xf32>
    %205 = arith.subf %192, %204 : vector<8x32xf32>
    %cst_145 = arith.constant 9.99999996E-13 : f32
    %206 = vector.broadcast %cst_145 : f32 to vector<8x1xf32>
    %207 = arith.addf %203, %206 : vector<8x1xf32>
    %208 = math.rsqrt %207 : vector<8x1xf32>
    %209 = vector.broadcast %208 : vector<8x1xf32> to vector<8x32xf32>
    %210 = arith.mulf %205, %209 : vector<8x32xf32>
    %211 = vector.broadcast %12 : vector<1x32xf32> to vector<8x32xf32>
    %212 = arith.mulf %210, %211 : vector<8x32xf32>
    %213 = vector.broadcast %13 : vector<1x32xf32> to vector<8x32xf32>
    %214 = arith.addf %212, %213 : vector<8x32xf32>
    %215 = arith.truncf %214 : vector<8x32xf32> to vector<8x32xbf16>
    %c0_146 = arith.constant 0 : index
    %c0_147 = arith.constant 0 : index
    %c0_148 = arith.constant 0 : index
    %216 = vector.load %arg7[%c0_146, %c0_147, %c0_148] : memref<1x32x64xbf16, #tpu.memory_space<vmem>>, vector<1x32x64xbf16>
    %217 = vector.shape_cast %216 : vector<1x32x64xbf16> to vector<32x64xbf16>
    %cst_149 = arith.constant dense<0.000000e+00> : vector<8x64xf32>
    %218 = tpu.matmul %215, %217, %cst_149 {dimension_numbers = #tpu.dot_dimension_numbers<[1], [0], [0], [1], [0, 0, 1, 1], [], []>} : vector<8x32xbf16>, vector<32x64xbf16>, vector<8x64xf32> -> vector<8x64xf32>
    %c0_150 = arith.constant 0 : index
    %c0_151 = arith.constant 0 : index
    %c0_152 = arith.constant 0 : index
    %219 = vector.load %arg8[%c0_150, %c0_151, %c0_152] : memref<1x1x64xf32, #tpu.memory_space<vmem>>, vector<1x1x64xf32>
    %220 = vector.shape_cast %219 : vector<1x1x64xf32> to vector<1x64xf32>
    %221 = vector.broadcast %220 : vector<1x64xf32> to vector<8x64xf32>
    %222 = arith.addf %218, %221 : vector<8x64xf32>
    %cst_153 = arith.constant 5.000000e-01 : f32
    %223 = vector.broadcast %cst_153 : f32 to vector<8x64xf32>
    %224 = arith.mulf %223, %222 : vector<8x64xf32>
    %cst_154 = arith.constant 4.471500e-02 : f32
    %225 = vector.broadcast %cst_154 : f32 to vector<8x64xf32>
    %226 = arith.mulf %225, %222 : vector<8x64xf32>
    %227 = arith.mulf %226, %222 : vector<8x64xf32>
    %228 = arith.mulf %227, %222 : vector<8x64xf32>
    %229 = arith.addf %222, %228 : vector<8x64xf32>
    %cst_155 = arith.constant 0.797884583 : f32
    %230 = vector.broadcast %cst_155 : f32 to vector<8x64xf32>
    %231 = arith.mulf %230, %229 : vector<8x64xf32>
    %232 = math.tanh %231 : vector<8x64xf32>
    %cst_156 = arith.constant 1.000000e+00 : f32
    %233 = vector.broadcast %cst_156 : f32 to vector<8x64xf32>
    %234 = arith.addf %233, %232 : vector<8x64xf32>
    %235 = arith.mulf %224, %234 : vector<8x64xf32>
    %236 = arith.truncf %235 : vector<8x64xf32> to vector<8x64xbf16>
    %c0_157 = arith.constant 0 : index
    %c0_158 = arith.constant 0 : index
    %c0_159 = arith.constant 0 : index
    %237 = vector.load %arg9[%c0_157, %c0_158, %c0_159] : memref<1x64x32xbf16, #tpu.memory_space<vmem>>, vector<1x64x32xbf16>
    %238 = vector.shape_cast %237 : vector<1x64x32xbf16> to vector<64x32xbf16>
    %cst_160 = arith.constant dense<0.000000e+00> : vector<8x32xf32>
    %239 = tpu.matmul %236, %238, %cst_160 {dimension_numbers = #tpu.dot_dimension_numbers<[1], [0], [0], [1], [0, 0, 1, 1], [], []>} : vector<8x64xbf16>, vector<64x32xbf16>, vector<8x32xf32> -> vector<8x32xf32>
    %240 = vector.broadcast %14 : vector<1x32xf32> to vector<8x32xf32>
    %241 = arith.addf %239, %240 : vector<8x32xf32>
    %242 = arith.addf %214, %241 : vector<8x32xf32>
    %cst_161 = arith.constant dense<0.000000e+00> : vector<8xf32>
    %243 = vector.multi_reduction <add>, %242, %cst_161 [1] : vector<8x32xf32> to vector<8xf32>
    %244 = vector.shape_cast %243 : vector<8xf32> to vector<8x1xf32>
    %cst_162 = arith.constant 3.200000e+01 : f32
    %245 = vector.broadcast %cst_162 : f32 to vector<8x1xf32>
    %246 = arith.divf %244, %245 : vector<8x1xf32>
    %247 = vector.broadcast %246 : vector<8x1xf32> to vector<8x32xf32>
    %248 = arith.subf %242, %247 : vector<8x32xf32>
    %249 = arith.mulf %248, %248 : vector<8x32xf32>
    %cst_163 = arith.constant dense<0.000000e+00> : vector<8xf32>
    %250 = vector.multi_reduction <add>, %249, %cst_163 [1] : vector<8x32xf32> to vector<8xf32>
    %251 = vector.shape_cast %250 : vector<8xf32> to vector<8x1xf32>
    %cst_164 = arith.constant 3.200000e+01 : f32
    %252 = vector.broadcast %cst_164 : f32 to vector<8x1xf32>
    %253 = arith.divf %251, %252 : vector<8x1xf32>
    %254 = vector.broadcast %246 : vector<8x1xf32> to vector<8x32xf32>
    %255 = arith.subf %242, %254 : vector<8x32xf32>
    %cst_165 = arith.constant 9.99999996E-13 : f32
    %256 = vector.broadcast %cst_165 : f32 to vector<8x1xf32>
    %257 = arith.addf %253, %256 : vector<8x1xf32>
    %258 = math.rsqrt %257 : vector<8x1xf32>
    %259 = vector.broadcast %258 : vector<8x1xf32> to vector<8x32xf32>
    %260 = arith.mulf %255, %259 : vector<8x32xf32>
    %261 = vector.broadcast %15 : vector<1x32xf32> to vector<8x32xf32>
    %262 = arith.mulf %260, %261 : vector<8x32xf32>
    %263 = vector.broadcast %16 : vector<1x32xf32> to vector<8x32xf32>
    %264 = arith.addf %262, %263 : vector<8x32xf32>
    %c0_166 = arith.constant 0 : index
    %c0_167 = arith.constant 0 : index
    %265 = vector.load %arg15[%c0_166, %c0_167] : memref<8x32xf32, #tpu.memory_space<vmem>>, vector<8x32xf32>
    tpu.vector_store %arg15[%c0_166, %c0_167], %264 {strides = array<i32>} : memref<8x32xf32, #tpu.memory_space<vmem>>, vector<8x32xf32>,
    %c1_i32 = arith.constant 1 : i32
    %266 = arith.cmpi eq, %arg1, %c1_i32 : i32
    %267 = arith.extui %266 : i1 to i32
    %c0_i32_168 = arith.constant 0 : i32
    %268 = arith.cmpi ne, %267, %c0_i32_168 : i32
    scf.if %268 {
      %c0_169 = arith.constant 0 : index
      %c0_170 = arith.constant 0 : index
      %c0_171 = arith.constant 0 : index
      %269 = vector.load %arg13[%c0_169, %c0_170, %c0_171] : memref<1x8x32xf32, #tpu.memory_space<vmem>>, vector<1x8x32xf32>
      %270 = vector.shape_cast %269 : vector<1x8x32xf32> to vector<8x32xf32>
      %271 = vector.shape_cast %264 : vector<8x32xf32> to vector<1x8x32xf32>
      tpu.vector_store %arg13[%c0_169, %c0_170, %c0_171], %271 {strides = array<i32>} : memref<1x8x32xf32, #tpu.memory_space<vmem>>, vector<1x8x32xf32>,
      %272 = arith.truncf %264 : vector<8x32xf32> to vector<8x32xbf16>
      %c0_172 = arith.constant 0 : index
      %c0_173 = arith.constant 0 : index
      %273 = vector.load %arg11[%c0_172, %c0_173] : memref<32x128xbf16, #tpu.memory_space<vmem>>, vector<32x128xbf16>
      %cst_174 = arith.constant dense<0.000000e+00> : vector<8x128xf32>
      %274 = tpu.matmul %272, %273, %cst_174 {dimension_numbers = #tpu.dot_dimension_numbers<[1], [0], [0], [1], [0, 0, 1, 1], [], []>} : vector<8x32xbf16>, vector<32x128xbf16>, vector<8x128xf32> -> vector<8x128xf32>
      %c0_175 = arith.constant 0 : index
      %c0_176 = arith.constant 0 : index
      %275 = vector.load %arg12[%c0_175, %c0_176] : memref<1x128xf32, #tpu.memory_space<vmem>>, vector<1x128xf32>
      %276 = vector.broadcast %275 : vector<1x128xf32> to vector<8x128xf32>
      %277 = arith.addf %274, %276 : vector<8x128xf32>
      %c0_177 = arith.constant 0 : index
      %c0_178 = arith.constant 0 : index
      %c0_179 = arith.constant 0 : index
      %278 = vector.load %arg14[%c0_177, %c0_178, %c0_179] : memref<1x8x128xf32, #tpu.memory_space<vmem>>, vector<1x8x128xf32>
      %279 = vector.shape_cast %278 : vector<1x8x128xf32> to vector<8x128xf32>
      %280 = vector.shape_cast %277 : vector<8x128xf32> to vector<1x8x128xf32>
      tpu.vector_store %arg14[%c0_177, %c0_178, %c0_179], %280 {strides = array<i32>} : memref<1x8x128xf32, #tpu.memory_space<vmem>>, vector<1x8x128xf32>,
    } else {
    }
    return
  }
  func.func @transform_0(%arg0: i32, %arg1: i32) -> (i32, i32, i32) {
    %c0_i32 = arith.constant 0 : i32
    %c0_i32_0 = arith.constant 0 : i32
    %c0_i32_1 = arith.constant 0 : i32
    return %arg0, %c0_i32, %c0_i32_0 : i32, i32, i32
  }
  func.func @transform_1(%arg0: i32, %arg1: i32) -> (i32, i32, i32) {
    %c0_i32 = arith.constant 0 : i32
    %c0_i32_0 = arith.constant 0 : i32
    %c0_i32_1 = arith.constant 0 : i32
    return %arg0, %c0_i32, %c0_i32_0 : i32, i32, i32
  }
  func.func @transform_2(%arg0: i32, %arg1: i32) -> (i32, i32, i32, i32) {
    %c0_i32 = arith.constant 0 : i32
    %c0_i32_0 = arith.constant 0 : i32
    %c0_i32_1 = arith.constant 0 : i32
    %c0_i32_2 = arith.constant 0 : i32
    return %arg1, %c0_i32, %c0_i32_0, %c0_i32_1 : i32, i32, i32, i32
  }
  func.func @transform_3(%arg0: i32, %arg1: i32) -> (i32, i32, i32, i32) {
    %c0_i32 = arith.constant 0 : i32
    %c0_i32_0 = arith.constant 0 : i32
    %c0_i32_1 = arith.constant 0 : i32
    %c0_i32_2 = arith.constant 0 : i32
    return %arg1, %c0_i32, %c0_i32_0, %c0_i32_1 : i32, i32, i32, i32
  }
  func.func @transform_4(%arg0: i32, %arg1: i32) -> (i32, i32, i32, i32) {
    %c0_i32 = arith.constant 0 : i32
    %c0_i32_0 = arith.constant 0 : i32
    %c0_i32_1 = arith.constant 0 : i32
    %c0_i32_2 = arith.constant 0 : i32
    return %arg1, %c0_i32, %c0_i32_0, %c0_i32_1 : i32, i32, i32, i32
  }
  func.func @transform_5(%arg0: i32, %arg1: i32) -> (i32, i32, i32) {
    %c0_i32 = arith.constant 0 : i32
    %c0_i32_0 = arith.constant 0 : i32
    %c0_i32_1 = arith.constant 0 : i32
    return %arg1, %c0_i32, %c0_i32_0 : i32, i32, i32
  }
  func.func @transform_6(%arg0: i32, %arg1: i32) -> (i32, i32, i32) {
    %c0_i32 = arith.constant 0 : i32
    %c0_i32_0 = arith.constant 0 : i32
    %c0_i32_1 = arith.constant 0 : i32
    return %arg1, %c0_i32, %c0_i32_0 : i32, i32, i32
  }
  func.func @transform_7(%arg0: i32, %arg1: i32) -> (i32, i32, i32) {
    %c0_i32 = arith.constant 0 : i32
    %c0_i32_0 = arith.constant 0 : i32
    %c0_i32_1 = arith.constant 0 : i32
    return %arg1, %c0_i32, %c0_i32_0 : i32, i32, i32
  }
  func.func @transform_8(%arg0: i32, %arg1: i32) -> (i32, i32, i32) {
    %c0_i32 = arith.constant 0 : i32
    %c0_i32_0 = arith.constant 0 : i32
    %c0_i32_1 = arith.constant 0 : i32
    return %arg1, %c0_i32, %c0_i32_0 : i32, i32, i32
  }
  func.func @transform_9(%arg0: i32, %arg1: i32) -> (i32, i32) {
    %c0_i32 = arith.constant 0 : i32
    %c0_i32_0 = arith.constant 0 : i32
    %c0_i32_1 = arith.constant 0 : i32
    return %c0_i32, %c0_i32_0 : i32, i32
  }
  func.func @transform_10(%arg0: i32, %arg1: i32) -> (i32, i32) {
    %c0_i32 = arith.constant 0 : i32
    %c0_i32_0 = arith.constant 0 : i32
    %c0_i32_1 = arith.constant 0 : i32
    return %c0_i32, %c0_i32_0 : i32, i32
  }
  func.func @transform_11(%arg0: i32, %arg1: i32) -> (i32, i32, i32) {
    %c0_i32 = arith.constant 0 : i32
    %c0_i32_0 = arith.constant 0 : i32
    %c0_i32_1 = arith.constant 0 : i32
    return %arg0, %c0_i32, %c0_i32_0 : i32, i32, i32
  }
  func.func @transform_12(%arg0: i32, %arg1: i32) -> (i32, i32, i32) {
    %c0_i32 = arith.constant 0 : i32
    %c0_i32_0 = arith.constant 0 : i32
    %c0_i32_1 = arith.constant 0 : i32
    return %arg0, %c0_i32, %c0_i32_0 : i32, i32, i32
  }
}

</mosaic_0001>

<bundles_post_ra>
// kernel: encode.1
= control target key start
LH: loop header
LB: loop body
LE: loop exit
PB: predicated region body
PF: predicated region fallthrough
CT: control target
= control target key end

     0   :  { %s2619_s0 = inlined_call_operand.vmem [shape: f32[2,8,32], index: 0, kind: input, shape index: {}]   ;;  %s2620_s1 = inlined_call_operand.vmem [shape: f32[2,1,8], index: 1, kind: input, shape index: {}]   ;;  %s2621_s2 = inlined_call_operand.vmem [shape: bf16[2,12,32,8], index: 2, kind: input, shape index: {}]   ;;  %s2622_s3 = inlined_call_operand.vmem [shape: f32[2,12,1,8], index: 3, kind: input, shape index: {}]   ;;  %s2623_s4 = inlined_call_operand.vmem [shape: bf16[2,4,8,32], index: 4, kind: input, shape index: {}]   ;;  %s2624_s5 = inlined_call_operand.vmem [shape: bf16[2,32,64], index: 5, kind: input, shape index: {}]   ;;  %s2625_s6 = inlined_call_operand.vmem [shape: f32[2,1,64], index: 6, kind: input, shape index: {}]   ;;  %s2626_s7 = inlined_call_operand.vmem [shape: bf16[2,64,32], index: 7, kind: input, shape index: {}]   ;;  %s2627_s8 = inlined_call_operand.vmem [shape: f32[2,6,32], index: 8, kind: input, shape index: {}]   ;;  %s2628_s9 = inlined_call_operand.vmem [shape: bf16[32,128], index: 9, kind: input, shape index: {}]   ;;  %s2629_s10 = inlined_call_operand.vmem [shape: f32[1,128], index: 10, kind: input, shape index: {}]   ;;  %s2630_s11 = inlined_call_operand.hbm [shape: f32[2,8,32], index: 11, kind: output, shape index: {0}]   ;;  %s2631_s12 = inlined_call_operand.vmem [shape: f32[2,8,128], index: 12, kind: output, shape index: {1}]  }
   0x1   :  { %2647 = sst [smem:[#allocation18_spill]] %s2619_s0 }
   0x2   :  { %2648 = sst [smem:[#allocation19_spill]] %s2620_s1 }
   0x3   :  { %2649 = sst [smem:[#allocation20_spill]] %s2621_s2 }
   0x4   :  { %2650 = sst [smem:[#allocation21_spill]] %s2623_s4 }
   0x5   :  { %2651 = sst [smem:[#allocation22_spill]] %s2628_s9 }
   0x6   :  { %2652 = sst [smem:[#allocation23_spill]] %s2629_s10 }
   0x7   :  { %2653 = sst [smem:[#allocation24_spill]] %s2630_s11 }
   0x8   :  { %18 = vsyncpa [#allocation4], 0 }
   0x9   :  { %20 = vsyncpa [#allocation4 + $0x1], 0  ;;  %s2270_s21 = smov 0   ;;  %s2272_s22 = smov 0  }
   0xa   :  { %s2274_s23 = smov 0   ;;  %s2276_s24 = smov 0  }
   0xb   :  { %s2278_s25 = smov 0   ;;  %s2280_s26 = smov 0  }
   0xc   :  { %s2282_s27 = smov 0   ;;  %s2284_s28 = smov 0  }
   0xd LB: > { %2654 = sst [smem:[#allocation6_spill]] %s2174_s21  ;;  %s1725_s29 = sadd.s32 4294967295, %s2202_s28   ;;  %s2202_s28 = sphi %s2284_s28, %s26_s28   ;;  %s2198_s27 = sphi %s2282_s27, %s2690_s27   ;;  %s2194_s26 = sphi %s2280_s26, %s2689_s26   ;;  %s2190_s25 = sphi %s2278_s25, %s2688_s25   ;;  %s2186_s24 = sphi %s2276_s24, %s2687_s24   ;;  %s2182_s23 = sphi %s2274_s23, %s2686_s23   ;;  %s2178_s22 = sphi %s2272_s22, %s2685_s22   ;;  %s2174_s21 = sphi %s2270_s21, %s2684_s21  }
   0xe   : > { %2655 = sst [smem:[#allocation7_spill]] %s2178_s22  ;;  %s1726_s30 = sadd.s32 4294967294, %s2202_s28  }
   0xf   : > { %2656 = sst [smem:[#allocation8_spill]] %s2182_s23  ;;  %s35_s13 = sadd.s32 1, %s2194_s26 }
  0x10   : > { %2657 = sst [smem:[#allocation9_spill]] %s2190_s25  ;;  %p36_p0 = scmp.ge.s32.totalorder %s35_s13, 2 }
  0x11   : > { %2658 = sst [smem:[#allocation10_spill]] %s2194_s26  ;;  %s38_s14 = sadd.s32 1, %s2198_s27 }
  0x12   : > { %2659 = sst [smem:[#allocation11_spill]] %s2198_s27  ;;  %p331_p1 = scmp.ne.s32.totalorder %s2182_s23, %s2178_s22 }
  0x13   : > { %2660 = sst [smem:[#allocation12_spill]] %s2202_s28  ;;  %p332_p2 = scmp.eq.s32.totalorder %s1725_s29, 3 }
  0x14   : > { %s2692_s13 = smov (%p36_p0, %s35_s13), 0  ;;  %s2694_s14 = smov (!%p36_p0, %s38_s14), %s2198_s27 }
  0x15   : > { %2661 = sst [smem:[#allocation13_spill]] %s2692_s13  ;;  %p2319_p3 = por %p332_p2, %p331_p1 }
  0x16   : > { %p337_p4 = scmp.ne.s32.totalorder %s2178_s22, %s2174_s21  ;;  %p40_p5 = scmp.ge.s32.totalorder %s2694_s14, 2 }
  0x17   : > { %s2662_s15 = scalar_select %p2319_p3, 1, 0 }
  0x18   : > { %p338_p6 = scmp.eq.s32.totalorder %s1726_s30, 3  ;;  %p1729_p7 = scmp.ge.s32.totalorder %s2202_s28, 1 }
  0x19   : > { %2663 = sst [smem:[#allocation14_spill]] %s2662_s15  ;;  %p453_p8 = scmp.lt.s32.totalorder %s2202_s28, 5 }
  0x1a   : > { %s2696_s14 = smov (%p40_p5, %s2694_s14), 0  ;;  %p2329_p9 = por %p338_p6, %p337_p4 }
  0x1b   : > { %2664 = sst [smem:[#allocation15_spill]] %s2696_s14  ;;  %p454_p10 = pnand %p1729_p7, %p453_p8 }
  0x1c   : > { %s2665_s16 = scalar_select %p2329_p9, 1, 0 }
  0x1d   : > { %s318_s17 = ssub.s32 %s2198_s27, %s2696_s14  ;;  %s321_s18 = sadd.s32 1, %s2182_s23 }
  0x1e   : > { %2666 = sst [smem:[#allocation16_spill]] %s2665_s16  ;;  %p319_p11 = scmp.eq.s32.totalorder %s318_s17, 0 }
  0x1f   : > { %457 = sbr.rel (%p454_p10) target bundleno = 3319 (0xcf7), region = 64  ;;  %s2633_s20 = sand.u32 (!%p454_p10), 1, %s2178_s22  }
  0x20   : > { %s2337_s19 = scalar_select %p319_p11, %s2182_s23, %s321_s18  }
  0x21   : > { %p532_p12 = scmp.lt.s32.totalorder (!%p454_p10), %s2190_s25, 1  ;;  %s2343_s29 = sshll.u32 (!%p454_p10), %s2633_s20, 3 }
  0x22   : > { %2667 = sst [smem:[#allocation17_spill]] %s2337_s19  ;;  %p539_p13 = scmp.lt.s32.totalorder (!%p454_p10), %s2186_s24, 1 }
  0x23   : > { %s2669_s0 = sld [smem:[#allocation18_spill]] (!%p454_p10)  ;;  %s525_s27 = scalar_lea.vmem (!%p454_p10), [#allocation3], %s2343_s29 }
  0x24   : > { %s2347_s30 = scalar_select %p532_p12, %s2190_s25, 1 }
  0x25   : > { %s2350_s17 = scalar_select %p539_p13, %s2186_s24, 1 }
  0x26   : > { %s1731_s18 = sshll.u32 %s2347_s30, 3  ;;  %s2670_s2 = sld [smem:[#allocation20_spill]] }
  0x27   : > { %s1995_s23 = smul.u32 192, %s2350_s17  ;;  %s1960_s21 = sshll.u32 %s2350_s17, 4 }
  0x28   : > { %s1996_s16 = smul.u32 12, %s2350_s17  ;;  %s2671_s4 = sld [smem:[#allocation21_spill]] }
  0x29   : > { %s535_s19 = scalar_lea.vmem %s2669_s0, %s1731_s18  ;;  %s2381_s0 = scalar_lea.vmem %s2624_s5, %s1960_s21 }
  0x2a   : > { %s2376_s20 = scalar_lea.vmem %s2622_s3, %s1996_s16  ;;  %s560_s11 = scalar_lea.vmem %s2625_s6, %s2350_s17 }
  0x2b   : > { %s1739_s25 = sshll.u32 %s2350_s17, 3  ;;  %p1741_p0 = scmp.ne.s32.totalorder %s2186_s24, 0 }
  0x2c   : > { %s2366_s15 = scalar_lea.vmem %s2670_s2, %s1995_s23  ;;  %s1962_s23 = sshll.u32 %s2350_s17, 5 }
  0x2d   : > { %s2391_s22 = scalar_lea.vmem %s2626_s7, %s1962_s23  ;;  %s2397_s16 = scalar_lea.vmem %s2627_s8, %s1739_s25 }
  0x2e   : > { %s2371_s10 = scalar_lea.vmem %s2671_s4, %s1960_s21  ;;  %s2402_s21 = scalar_lea.vmem %s2631_s12, %s1731_s18 }
  0x2f   : > { %578 = sbr.rel (%p1741_p0) target bundleno = 54 (0x36), region = 68 }
  0x34   : > { %v579_v0 = vld [vmem:[%s535_s19] sm:$0xff]  ;;  %vm580_vm0 = vcmask 261120  }
  0x35   : > { %581 = vst.msk [vmem:[#allocation2] sm:$0xff] %vm580_vm0, %v579_v0 }
  0x36 PF: > { %v1964_v1 = vld [vmem:[%s2366_s15 + $0x8] sm:$0xff]  ;;  %v1963_v3 = vld [vmem:[%s2366_s15] sm:$0xff]  ;;  %vm619_vm1 = vcmask 261120   ;;  %vm699_vm2 = vcmask 64512   ;;  %v1972_v20 = vld [vmem:[%s2366_s15 + $0x58] sm:$0xff]  ;;  %s2672_s4 = sld [smem:[#allocation19_spill]] }
  0x37   : > { %v1966_v2 = vld [vmem:[%s2366_s15 + $0x48] sm:$0xff]  ;;  %v1965_v4 = vld [vmem:[%s2366_s15 + $0x40] sm:$0xff]  ;;  %629 = vmatpush.bf16.msra.mxu0 %v1964_v1  ;;  %v1971_v26 = vld [vmem:[%s2366_s15 + $0x50] sm:$0xff]  ;;  %vm734_vm3 = vcmask 1043456   ;;  %vm1430_vm8 = vcmask 523264   ;;  %p1946_p1 = scmp.ne.s32.totalorder %s2186_s24, 1 }
  0x38   : > { %660 = vmatpush.bf16.msra.mxu1 %v1966_v2  ;;  %v2070_v7 = vld [vmem:[%s2376_s20 + $0x4] ss:$0 sm:$0xff]  ;;  %v2069_v10 = vld [vmem:[%s2376_s20] ss:$0 sm:$0xff]  ;;  %v1968_v18 = vld [vmem:[%s2366_s15 + $0x88] sm:$0xff] }
  0x39   : > { %691 = vmatpush.bf16.msra.mxu2 %v1968_v18  ;;  %v1967_v19 = vld [vmem:[%s2366_s15 + $0x80] sm:$0xff]  ;;  %v1970_v27 = vld [vmem:[%s2366_s15 + $0x18] sm:$0xff]  ;;  %v1969_v28 = vld [vmem:[%s2366_s15 + $0x10] sm:$0xff] }
  0x3a   : > { %v2072_v36 = vld [vmem:[%s2376_s20 + $0x8] ss:$0 sm:$0xff]  ;;  %v2073_v41 = vld [vmem:[%s2376_s20 + $0x5] ss:$0 sm:$0xff]  ;;  %v1974_v48 = vld [vmem:[%s2366_s15 + $0x98] sm:$0xff] }
  0x3b   : > { %630 = vmatpush.bf16.msra.mxu0 %v1963_v3  ;;  %v1973_v49 = vld [vmem:[%s2366_s15 + $0x90] sm:$0xff]  ;;  %v2074_v54 = vld [vmem:[%s2376_s20 + $0x1] ss:$0 sm:$0xff]  ;;  %v2075_v59 = vld [vmem:[%s2376_s20 + $0x9] ss:$0 sm:$0xff] }
  0x3c   : > { %v2410_v5 = vld [vmem:[#allocation2] sm:$0xff]  ;;  %661 = vmatpush.bf16.msra.mxu1 %v1965_v4  ;;  %s2673_s9 = scalar_lea.vmem %s2672_s4, %s2347_s30 }
  0x3d   : > { %v2414_v6 = vpack.c.bf16 %v2410_v5, %v2410_v5  ;;  %692 = vmatpush.bf16.msra.mxu2 %v1967_v19  ;;  %v2434_v21 = vld [vmem:[%s2673_s9] ss:$0 sm:$0xff]  ;;  %v1976_v19 = vld [vmem:[%s2366_s15 + $0x28] sm:$0xff] }
  0x3e   : > { %v752_v57 = vld [vmem:[%s2371_s10] sm:$0xf] }
  0x3f   : > { %1758 = vmatmul.msk.bf16.vlgmr.msra.gmra.mxu0 %vm619_vm1, %v2414_v6  ;;  %1768 = vmatmul.msk.bf16.vlgmr.msra.gmra.mxu1 %vm619_vm1, %v2414_v6  ;;  %v937_v58 = vsel %vm734_vm3, %v752_v57, 0  ;;  %v1977_v18 = vld [vmem:[%s2366_s15 + $0x60] sm:$0xff] }
  0x40   : > { %1778 = vmatmul.msk.bf16.vlgmr.msra.gmra.mxu2 %vm619_vm1, %v2414_v6  ;;  %791 = vmatpush.bf16.msrb.mxu1 %v1970_v27 }
  0x41   : > { %822 = vmatpush.bf16.msrb.mxu2 %v1972_v20  ;;  %v1975_v20 = vld [vmem:[%s2366_s15 + $0x20] sm:$0xff] }
  0x44   : > { %792 = vmatpush.bf16.msrb.mxu1 %v1969_v28 }
  0x45   : > { %823 = vmatpush.bf16.msrb.mxu2 %v1971_v26  ;;  %v1825_v26 = vld [vmem:[%s2371_s10 + $0x4] sm:$0xf] }
  0x46   : > { %v918_v27 = vsel %vm734_vm3, %v1825_v26, 0  ;;  %v1985_v26 = vld [vmem:[%s2366_s15 + $0xb0] sm:$0xff] }
  0x49   : > { %927 = vmatpush.bf16.msra.mxu2 %v918_v27 }
  0x4f   : > { %1802 = vmatmul.msk.bf16.vlgmr.msrb.gmra.mxu1 %vm619_vm1, %v2414_v6 }
  0x50   : > { %1812 = vmatmul.msk.bf16.vlgmr.msrb.gmra.mxu2 %vm619_vm1, %v2414_v6 }
  0xbc   : > { %v632_v8 = vpop.f32.mrf.mxu0  ;;  %v663_v9 = vpop.f32.mrf.mxu1 }
  0xbd   : > { %v664_v11 = vadd.f32 %v2070_v7, %v663_v9  ;;  %v633_v13 = vadd.f32 %v2069_v10, %v632_v8 }
  0xbf   : > { %v667_v12 = vpack.c.bf16 %v664_v11, %v664_v11  ;;  %v636_v17 = vpack.c.bf16 %v633_v13, %v633_v13 }
  0xc1   : > { %v704_v14 = vsel %vm699_vm2, %v667_v12, 0 }
  0xc2   : > { %713 = vmatpush.bf16.xpose.msra.mxu3 %v704_v14 }
  0xc3   : > { %v694_v29 = vpop.f32.mrf.mxu2 }
  0xc4   : > { %v634_v15 = vpop.f32.mrf.mxu0  ;;  %v665_v16 = vpop.f32.mrf.mxu1  ;;  %v695_v37 = vadd.f32 %v2072_v36, %v694_v29  ;;  %v2077_v36 = vld [vmem:[%s2376_s20 + $0x2] ss:$0 sm:$0xff] }
  0xc6   : > { %v698_v38 = vpack.c.bf16 %v695_v37, %v695_v37 }
  0xc8   : > { %v736_v39 = vsel %vm734_vm3, %v698_v38, 0 }
  0xc9   : > { %1779 = vmatmul.msk.bf16.vlgmr.msra.gmra.mxu3 %vm699_vm2, %v636_v17  ;;  %745 = vmatpush.bf16.msrb.mxu0 %v736_v39  ;;  %v1978_v17 = vld [vmem:[%s2366_s15 + $0x68] sm:$0xff] }
  0xca   : > { %853 = vmatpush.bf16.msrb.mxu3 %v1974_v48 }
  0xcb   : > { %v696_v33 = vpop.f32.mrf.mxu2 }
  0xcc   : > { %v794_v45 = vpop.f32.mrf.mxu1  ;;  %v2076_v33 = vld [vmem:[%s2376_s20 + $0x6] ss:$0 sm:$0xff] }
  0xcd   : > { %v795_v55 = vadd.f32 %v2074_v54, %v794_v45 }
  0xce   : > { %854 = vmatpush.bf16.msrb.mxu3 %v1973_v49 }
  0xcf   : > { %v798_v56 = vpack.c.bf16 %v795_v55, %v795_v55 }
  0xd2   : > { %946 = vmatpush.bf16.msra.mxu3 %v937_v58 }
  0xd3   : > { %v825_v40 = vpop.f32.mrf.mxu2 }
  0xd4   : > { %v826_v42 = vadd.f32 %v2073_v41, %v825_v40  ;;  %v796_v47 = vpop.f32.mrf.mxu1 }
  0xd6   : > { %v829_v43 = vpack.c.bf16 %v826_v42, %v826_v42 }
  0xd8   : > { %v865_v44 = vsel %vm699_vm2, %v829_v43, 0  ;;  %v1980_v43 = vld [vmem:[%s2366_s15 + $0xa8] sm:$0xff] }
  0xd9   : > { %874 = vmatpush.bf16.xpose.msra.mxu0 %v865_v44  ;;  %1822 = vmatmul.msk.bf16.vlgmr.msrb.gmra.mxu3 %vm619_vm1, %v2414_v6  ;;  %v1979_v44 = vld [vmem:[%s2366_s15 + $0xa0] sm:$0xff] }
  0xda   : > { %1052 = vmatpush.bf16.msrb.mxu2 %v1980_v43  ;;  %v1918_v43 = vld [vmem:[%s2371_s10 + $0xc] sm:$0xf] }
  0xdb   : > { %v827_v46 = vpop.f32.mrf.mxu2 }
  0xde   : > { %1053 = vmatpush.bf16.msrb.mxu2 %v1979_v44  ;;  %v1298_v44 = vsel %vm734_vm3, %v1918_v43, 0 }
 0x14c   : > { %v715_v22 = vpop.f32.mrf.mxu3 }
 0x14d   : > { %v716_v23 = vadd.f32 %v2434_v21, %v715_v22 }
 0x14f   : > { %v719_v24 = vsel %vm699_vm2, %v716_v23, -inf }
 0x150   : > { %720 = vmax.xlane.f32.xlu0 %v719_v24 }
 0x154   : > { %v717_v25 = vpop.f32.mrf.mxu3 }
 0x15c   : > { %v856_v60 = vpop.f32.mrf.mxu3 }
 0x15d   : > { %v857_v62 = vadd.f32 %v2075_v59, %v856_v60 }
 0x15f   : > { %v860_v0 = vpack.c.bf16 %v857_v62, %v857_v62  ;;  %v1983_v62 = vld [vmem:[%s2366_s15 + $0x70] sm:$0xff] }
 0x161   : > { %v896_v1 = vsel %vm734_vm3, %v860_v0, 0  ;;  %v1981_v0 = vld [vmem:[%s2366_s15 + $0x30] sm:$0xff] }
 0x162   : > { %905 = vmatpush.bf16.msra.mxu1 %v896_v1  ;;  %v1872_v1 = vld [vmem:[%s2371_s10 + $0x8] sm:$0xf] }
 0x164   : > { %v858_v2 = vpop.f32.mrf.mxu3 }
 0x165   : > { %v1117_v2 = vsel %vm734_vm3, %v1872_v1, 0 }
 0x166   : > { %1021 = vmatpush.bf16.msrb.mxu1 %v1978_v17 }
 0x16a   : > { %1022 = vmatpush.bf16.msrb.mxu1 %v1977_v18 }
 0x1c3   : > { %v721_v30 = vpop.xlane.xlu0 %720 }
 0x1c4   : > { %v722_v31 = vsub.f32 %v716_v23, %v721_v30 }
 0x1c6   : > { %v723_v32 = vmul.f32 1.442695, %v722_v31 }
 0x1c8   : > { %2083 = vpow2.f32 %v723_v32 }
 0x1ce   : > { %v2084_v34 = vpop.eup %2083 }
 0x1cf   : > { %v725_v35 = vsel %vm699_vm2, %v2084_v34, 0.0 }
 0x1d0   : > { %726 = vadd.xlane.f32.xlu0 %v725_v35 }
 0x243   : > { %v727_v50 = vpop.xlane.xlu0 %726 }
 0x244   : > { %2085 = vrcp.f32 %v727_v50  ;;  %v1984_v50 = vld [vmem:[%s2366_s15 + $0x78] sm:$0xff] }
 0x24a   : > { %v2086_v51 = vpop.eup %2085 }
 0x24b   : > { %v729_v52 = vmul.f32 %v2086_v51, %v2084_v34  ;;  %v2078_v51 = vld [vmem:[%s2376_s20 + $0xa] ss:$0 sm:$0xff] }
 0x24d   : > { %v730_v53 = vpack.c.bf16 %v729_v52, %v729_v52 }
 0x24f   : > { %1780 = vmatmul.msk.bf16.vlgmr.msrb.gmra.mxu0 %vm699_vm2, %v730_v53 }
 0x250   : > { %990 = vmatpush.bf16.msrb.mxu0 %v1976_v19 }
 0x254   : > { %991 = vmatpush.bf16.msrb.mxu0 %v1975_v20  ;;  %v2080_v20 = vld [vmem:[%s2376_s20 + $0x3] ss:$0 sm:$0xff] }
 0x25f   : > { %1823 = vmatmul.msk.bf16.vlgmr.msra.gmra.mxu0 %vm699_vm2, %v798_v56 }
 0x26f   : > { %1849 = vmatmul.msk.bf16.vlgmr.msrb.gmra.mxu0 %vm619_vm1, %v2414_v6 }
 0x2cc   : > { %v747_v61 = vpop.f32.mrf.mxu0 }
 0x2cd   : > { %v751_v63 = vpack.c.bf16 %v747_v61, %v747_v61 }
 0x2cf   : > { %1827 = vmatmul.msk.bf16.vlgmr.msra.gmra.mxu3 %vm699_vm2, %v751_v63  ;;  %v1982_v63 = vld [vmem:[%s2366_s15 + $0x38] sm:$0xff] }
 0x2d4   : > { %v749_v3 = vpop.f32.mrf.mxu0 }
 0x2dc   : > { %v876_v4 = vpop.f32.mrf.mxu0 }
 0x2dd   : > { %v877_v7 = vadd.f32 %v2434_v21, %v876_v4 }
 0x2df   : > { %v880_v8 = vsel %vm699_vm2, %v877_v7, -inf }
 0x2e0   : > { %881 = vmax.xlane.f32.xlu1 %v880_v8 }
 0x2e4   : > { %v878_v9 = vpop.f32.mrf.mxu0 }
 0x2e5   : > { %v2079_v9 = vld [vmem:[%s2376_s20 + $0x7] ss:$0 sm:$0xff] }
 0x2ec   : > { %v993_v28 = vpop.f32.mrf.mxu0 }
 0x2ed   : > { %v994_v39 = vadd.f32 %v2077_v36, %v993_v28 }
 0x2ef   : > { %v997_v41 = vpack.c.bf16 %v994_v39, %v994_v39 }
 0x2f4   : > { %v995_v29 = vpop.f32.mrf.mxu0 }
 0x352   : > { %v2464_v10 = vpop.f32.mrf.mxu3 }
 0x353   : > { %v882_v11 = vpop.xlane.xlu1 %881 }
 0x354   : > { %v883_v12 = vsub.f32 %v877_v7, %v882_v11 }
 0x356   : > { %v884_v13 = vmul.f32 1.442695, %v883_v12 }
 0x358   : > { %2087 = vpow2.f32 %v884_v13 }
 0x35a   : > { %v950_v14 = vpop.f32.mrf.mxu3 }
 0x35e   : > { %v2088_v15 = vpop.eup %2087 }
 0x35f   : > { %v886_v16 = vsel %vm699_vm2, %v2088_v15, 0.0 }
 0x360   : > { %887 = vadd.xlane.f32.xlu1 %v886_v16 }
 0x3d3   : > { %v888_v22 = vpop.xlane.xlu1 %887 }
 0x3d4   : > { %2089 = vrcp.f32 %v888_v22 }
 0x3da   : > { %v2090_v23 = vpop.eup %2089 }
 0x3db   : > { %v890_v24 = vmul.f32 %v2090_v23, %v2088_v15 }
 0x3dd   : > { %v891_v25 = vpack.c.bf16 %v890_v24, %v890_v24 }
 0x3df   : > { %1824 = vmatmul.msk.bf16.vlgmr.msra.gmra.mxu1 %vm699_vm2, %v891_v25  ;;  %v1986_v25 = vld [vmem:[%s2366_s15 + $0xb8] sm:$0xff] }
 0x3e0   : > { %1126 = vmatpush.bf16.msra.mxu1 %v1117_v2 }
 0x3ef   : > { %1859 = vmatmul.msk.bf16.vlgmr.msrb.gmra.mxu1 %vm619_vm1, %v2414_v6 }
 0x45c   : > { %v907_v30 = vpop.f32.mrf.mxu1 }
 0x45d   : > { %v911_v31 = vpack.c.bf16 %v907_v30, %v907_v30 }
 0x45f   : > { %1826 = vmatmul.msk.bf16.vlgmr.msra.gmra.mxu2 %vm699_vm2, %v911_v31 }
 0x460   : > { %1171 = vmatpush.bf16.msra.mxu2 %v1982_v63 }
 0x464   : > { %v909_v32 = vpop.f32.mrf.mxu1  ;;  %1172 = vmatpush.bf16.msra.mxu2 %v1981_v0 }
 0x46c   : > { %v1024_v34 = vpop.f32.mrf.mxu1 }
 0x46d   : > { %v1025_v35 = vadd.f32 %v2076_v33, %v1024_v34 }
 0x46f   : > { %v1028_v37 = vpack.c.bf16 %v1025_v35, %v1025_v35  ;;  %1869 = vmatmul.msk.bf16.vlgmr.msrb.gmra.mxu2 %vm619_vm1, %v2414_v6  ;;  %v2081_v35 = vld [vmem:[%s2376_s20 + $0xb] ss:$0 sm:$0xff]  ;;  %s2674_s20 = sld [smem:[#allocation22_spill]] (!%p1946_p1) }
 0x471   : > { %v1064_v38 = vsel %vm699_vm2, %v1028_v37, 0 }
 0x472   : > { %1073 = vmatpush.bf16.xpose.msrb.mxu3 %v1064_v38 }
 0x474   : > { %v1026_v40 = vpop.f32.mrf.mxu1 }
 0x479   : > { %1870 = vmatmul.msk.bf16.vlgmr.msrb.gmra.mxu3 %vm699_vm2, %v997_v41 }
 0x47a   : > { %1202 = vmatpush.bf16.msra.mxu3 %v1984_v50 }
 0x47e   : > { %1203 = vmatpush.bf16.msra.mxu3 %v1983_v62 }
 0x47f   : > { %1895 = vmatmul.msk.bf16.vlgmr.msra.gmra.mxu2 %vm619_vm1, %v2414_v6 }
 0x482   : > { %1307 = vmatpush.bf16.msrb.mxu3 %v1298_v44 }
 0x489   : > { %1905 = vmatmul.msk.bf16.vlgmr.msra.gmra.mxu3 %vm619_vm1, %v2414_v6 }
 0x4e2   : > { %v2483_v42 = vpop.f32.mrf.mxu2 }
 0x4e3   : > { %v949_v27 = vadd.f32 %v2464_v10, %v2483_v42 }
 0x4ea   : > { %v931_v45 = vpop.f32.mrf.mxu2 }
 0x4f2   : > { %v1055_v52 = vpop.f32.mrf.mxu2 }
 0x4f3   : > { %v1056_v53 = vadd.f32 %v2078_v51, %v1055_v52  ;;  %v2526_v52 = vld [vmem:[%s2397_s16] sm:$0x3f] }
 0x4f4   : > { %v1405_v44 = vperm.slane %v2526_v52, 3 }
 0x4f5   : > { %v1059_v55 = vpack.c.bf16 %v1056_v53, %v1056_v53  ;;  %v1314_v53 = vperm.slane %v2526_v52, 0 }
 0x4f7   : > { %v1095_v57 = vsel %vm734_vm3, %v1059_v55, 0 }
 0x4f8   : > { %1104 = vmatpush.bf16.msra.mxu0 %v1095_v57 }
 0x4fa   : > { %v1057_v59 = vpop.f32.mrf.mxu2 }
 0x4fc   : > { %v1075_v46 = vpop.f32.mrf.mxu3  ;;  %1233 = vmatpush.bf16.msrb.mxu0 %v1986_v25 }
 0x4fd   : > { %v1076_v47 = vadd.f32 %v2434_v21, %v1075_v46 }
 0x4ff   : > { %v1079_v48 = vsel %vm699_vm2, %v1076_v47, -inf }
 0x500   : > { %1080 = vmax.xlane.f32.xlu2 %v1079_v48  ;;  %1234 = vmatpush.bf16.msrb.mxu0 %v1985_v26 }
 0x502   : > { %v1174_v16 = vpop.f32.mrf.mxu2 }
 0x503   : > { %v1175_v23 = vadd.f32 %v2080_v20, %v1174_v16 }
 0x504   : > { %v1077_v49 = vpop.f32.mrf.mxu3 }
 0x505   : > { %v1178_v24 = vpack.c.bf16 %v1175_v23, %v1175_v23 }
 0x50a   : > { %v1176_v17 = vpop.f32.mrf.mxu2 }
 0x50c   : > { %v1205_v11 = vpop.f32.mrf.mxu3 }
 0x50d   : > { %v1206_v12 = vadd.f32 %v2079_v9, %v1205_v11  ;;  %v1988_v9 = vld [vmem:[%s2381_s0 + $0x8] sm:$0xff]  ;;  %v1987_v11 = vld [vmem:[%s2381_s0] sm:$0xff] }
 0x50f   : > { %v1209_v13 = vpack.c.bf16 %v1206_v12, %v1206_v12 }
 0x511   : > { %v1245_v14 = vsel %vm699_vm2, %v1209_v13, 0 }
 0x512   : > { %1254 = vmatpush.bf16.xpose.msrb.mxu1 %v1245_v14 }
 0x514   : > { %v1207_v15 = vpop.f32.mrf.mxu3 }
 0x573   : > { %v1081_v54 = vpop.xlane.xlu2 %1080 }
 0x574   : > { %v1082_v56 = vsub.f32 %v1076_v47, %v1081_v54 }
 0x576   : > { %v1083_v58 = vmul.f32 1.442695, %v1082_v56 }
 0x578   : > { %2091 = vpow2.f32 %v1083_v58 }
 0x57e   : > { %v2092_v60 = vpop.eup %2091 }
 0x57f   : > { %v1085_v61 = vsel %vm699_vm2, %v2092_v60, 0.0 }
 0x580   : > { %1086 = vadd.xlane.f32.xlu2 %v1085_v61 }
 0x5f3   : > { %v1087_v3 = vpop.xlane.xlu2 %1086 }
 0x5f4   : > { %2093 = vrcp.f32 %v1087_v3 }
 0x5fa   : > { %v2094_v4 = vpop.eup %2093 }
 0x5fb   : > { %v1089_v7 = vmul.f32 %v2094_v4, %v2092_v60  ;;  %v2204_v60 = vmov 32.0  }
 0x5fd   : > { %v1090_v8 = vpack.c.bf16 %v1089_v7, %v1089_v7 }
 0x5ff   : > { %1871 = vmatmul.msk.bf16.vlgmr.msra.gmra.mxu0 %vm699_vm2, %v1090_v8 }
 0x600   : > { %1380 = vmatpush.bf16.msra.mxu0 %v1988_v9 }
 0x604   : > { %1381 = vmatpush.bf16.msra.mxu0 %v1987_v11 }
 0x60f   : > { %1915 = vmatmul.msk.bf16.vlgmr.msrb.gmra.mxu0 %vm619_vm1, %v2414_v6 }
 0x67c   : > { %v1106_v18 = vpop.f32.mrf.mxu0 }
 0x67d   : > { %v1110_v19 = vpack.c.bf16 %v1106_v18, %v1106_v18 }
 0x67f   : > { %1873 = vmatmul.msk.bf16.vlgmr.msra.gmra.mxu1 %vm699_vm2, %v1110_v19 }
 0x684   : > { %v1108_v22 = vpop.f32.mrf.mxu0 }
 0x685   : > { %v1346_v22 = vperm.slane %v2526_v52, 1 }
 0x68c   : > { %v1236_v36 = vpop.f32.mrf.mxu0 }
 0x68d   : > { %v1237_v37 = vadd.f32 %v2081_v35, %v1236_v36 }
 0x68f   : > { %1916 = vmatmul.msk.bf16.vlgmr.msrb.gmra.mxu1 %vm699_vm2, %v1178_v24  ;;  %v1240_v38 = vpack.c.bf16 %v1237_v37, %v1237_v37  ;;  %v1348_v24 = vperm.slane %v2526_v52, 2 }
 0x691   : > { %v1276_v10 = vsel %vm734_vm3, %v1240_v38, 0 }
 0x692   : > { %1285 = vmatpush.bf16.msrb.mxu2 %v1276_v10 }
 0x694   : > { %v1238_v39 = vpop.f32.mrf.mxu0 }
 0x6fc   : > { %v1128_v28 = vpop.f32.mrf.mxu1 }
 0x6fd   : > { %v1132_v29 = vadd.f32 %v1128_v28, %v949_v27 }
 0x704   : > { %v1130_v30 = vpop.f32.mrf.mxu1 }
 0x705   : > { %v1991_v30 = vld [vmem:[%s2391_s22 + $0x10] sm:$0xff] }
 0x70c   : > { %v1256_v31 = vpop.f32.mrf.mxu1 }
 0x70d   : > { %v1257_v32 = vadd.f32 %v2434_v21, %v1256_v31  ;;  %v1990_v31 = vld [vmem:[%s2391_s22 + $0x8] sm:$0xff] }
 0x70f   : > { %v1260_v33 = vsel %vm699_vm2, %v1257_v32, -inf }
 0x710   : > { %1261 = vmax.xlane.f32.xlu0 %v1260_v33  ;;  %v2082_v33 = vld [vmem:[%s560_s11] ss:$0 sm:$0xff]  ;;  %s2675_s11 = sld [smem:[#allocation23_spill]] (!%p1946_p1) }
 0x714   : > { %v1258_v34 = vpop.f32.mrf.mxu1 }
 0x783   : > { %v1262_v40 = vpop.xlane.xlu0 %1261 }
 0x784   : > { %v1263_v41 = vsub.f32 %v1257_v32, %v1262_v40  ;;  %v1989_v32 = vld [vmem:[%s2391_s22] sm:$0xff] }
 0x786   : > { %v1264_v6 = vmul.f32 1.442695, %v1263_v41 }
 0x788   : > { %2095 = vpow2.f32 %v1264_v6 }
 0x78e   : > { %v2096_v42 = vpop.eup %2095 }
 0x78f   : > { %v1266_v21 = vsel %vm699_vm2, %v2096_v42, 0.0 }
 0x790   : > { %1267 = vadd.xlane.f32.xlu1 %v1266_v21 }
 0x803   : > { %v1268_v45 = vpop.xlane.xlu1 %1267 }
 0x804   : > { %2097 = vrcp.f32 %v1268_v45 }
 0x805   : > { %2099 = vrcp.f32 %v2204_v60 }
 0x80a   : > { %v2098_v46 = vpop.eup %2097 }
 0x80b   : > { %v1270_v47 = vmul.f32 %v2098_v46, %v2096_v42  ;;  %v2100_v61 = vpop.eup %2099 }
 0x80c   : > { %v1321_v62 = vmul.f32 32.0, %v2100_v61  ;;  %vm1325_vm4 = vweird.f32 %v2100_v61 }
 0x80d   : > { %v1271_v48 = vpack.c.bf16 %v1270_v47, %v1270_v47 }
 0x80e   : > { %v1322_v63 = vsub.f32 1.0, %v1321_v62 }
 0x80f   : > { %1917 = vmatmul.msk.bf16.vlgmr.msrb.gmra.mxu2 %vm699_vm2, %v1271_v48 }
 0x810   : > { %v1323_v0 = vmul.f32 %v2100_v61, %v1322_v63 }
 0x812   : > { %v1324_v1 = vadd.f32 %v2100_v61, %v1323_v0 }
 0x814   : > { %v2531_v2 = vsel %vm1325_vm4, %v2100_v61, %v1324_v1  ;;  %v1470_v1 = vperm.slane %v2526_v52, 4 }
 0x892   : > { %v1287_v49 = vpop.f32.mrf.mxu2 }
 0x893   : > { %v1291_v50 = vpack.c.bf16 %v1287_v49, %v1287_v49 }
 0x895   : > { %1919 = vmatmul.msk.bf16.vlgmr.msrb.gmra.mxu3 %vm699_vm2, %v1291_v50 }
 0x89a   : > { %v1289_v51 = vpop.f32.mrf.mxu2 }
 0x918   : > { %v1309_v54 = vpop.f32.mrf.mxu3 }
 0x919   : > { %v1313_v55 = vadd.f32 %v1309_v54, %v1132_v29  ;;  %v1992_v29 = vld [vmem:[%s2391_s22 + $0x18] sm:$0xff] }
 0x91a   : > { %1438 = vmatpush.bf16.msra.mxu1 %v1992_v29 }
 0x91b   : > { %v1315_v56 = vadd.f32 %v1314_v53, %v1313_v55 }
 0x91d   : > { %v1316_v57 = vadd.f32 %v1315_v56, %v2410_v5 }
 0x91e   : > { %1439 = vmatpush.bf16.msra.mxu1 %v1991_v30 }
 0x91f   : > { %v1317_v58 = vsel %vm619_vm1, %v1316_v57, 0.0 }
 0x920   : > { %1318 = vadd.xlane.f32.xlu2 %v1317_v58  ;;  %v1311_v59 = vpop.f32.mrf.mxu3 }
 0x922   : > { %1440 = vmatpush.bf16.msra.mxu1 %v1990_v31 }
 0x926   : > { %1441 = vmatpush.bf16.msra.mxu1 %v1989_v32 }
 0x993   : > { %v1319_v3 = vpop.xlane.xlu2 %1318 }
 0x994   : > { %v1327_v4 = vmul.f32 %v2531_v2, %v1319_v3 }
 0x996   : > { %v1328_v5 = vsub.f32 %v1316_v57, %v1327_v4  ;;  %v1472_v4 = vperm.slane %v2526_v52, 5 }
 0x998   : > { %v1329_v7 = vmul.f32 %v1328_v5, %v1328_v5 }
 0x99a   : > { %v1330_v8 = vsel %vm619_vm1, %v1329_v7, 0.0 }
 0x99b   : > { %1331 = vadd.xlane.f32.xlu0 %v1330_v8 }
 0xa0e   : > { %v1332_v12 = vpop.xlane.xlu0 %1331 }
 0xa0f   : > { %v1333_v13 = vmul.f32 %v1332_v12, %v2531_v2 }
 0xa11   : > { %v1334_v14 = vadd.f32 1e-12, %v1333_v13 }
 0xa13   : > { %2101 = vrsqrt.f32 %v1334_v14  ;;  %vm1341_vm6 = vweird.f32 %v1334_v14 }
 0xa19   : > { %v2102_v15 = vpop.eup %2101 }
 0xa1a   : > { %v1336_v16 = vmul.f32 %v2102_v15, %v1334_v14  ;;  %vm1342_vm5 = vweird.f32 %v2102_v15 }
 0xa1b   : > { %vm1343_vm7 = vmor %vm1341_vm6, %vm1342_vm5 }
 0xa1c   : > { %v1337_v17 = vmul.f32 %v2102_v15, %v1336_v16 }
 0xa1e   : > { %v1338_v18 = vmul.f32 0.5, %v1337_v17 }
 0xa20   : > { %v1339_v19 = vsub.f32 1.5, %v1338_v18 }
 0xa22   : > { %v1340_v20 = vmul.f32 %v2102_v15, %v1339_v19 }
 0xa24   : > { %v1344_v23 = vsel %vm1343_vm7, %v2102_v15, %v1340_v20 }
 0xa25   : > { %v1345_v25 = vmul.f32 %v1344_v23, %v1328_v5 }
 0xa27   : > { %v1347_v26 = vmul.f32 %v1346_v22, %v1345_v25 }
 0xa29   : > { %v1349_v27 = vadd.f32 %v1348_v24, %v1347_v26 }
 0xa2b   : > { %v1350_v28 = vpack.c.bf16 %v1349_v27, %v1349_v27 }
 0xa2d   : > { %1928 = vmatmul.msk.bf16.vlgmr.msra.gmra.mxu0 %vm619_vm1, %v1350_v28 }
 0xaaa   : > { %v1383_v34 = vpop.f32.mrf.mxu0 }
 0xaab   : > { %v1384_v35 = vadd.f32 %v2082_v33, %v1383_v34 }
 0xaad   : > { %v1388_v36 = vmul.f32 0.044715, %v1384_v35  ;;  %v1387_v6 = vmul.f32 0.5, %v1384_v35 }
 0xaaf   : > { %v1389_v37 = vmul.f32 %v1388_v36, %v1384_v35 }
 0xab1   : > { %v1390_v38 = vmul.f32 %v1389_v37, %v1384_v35 }
 0xab2   : > { %v1385_v10 = vpop.f32.mrf.mxu0 }
 0xab3   : > { %v1391_v39 = vadd.f32 %v1390_v38, %v1384_v35 }
 0xab5   : > { %v1392_v40 = vmul.f32 0.7978846, %v1391_v39 }
 0xab7   : > { %2103 = vtanh.f32 %v1392_v40 }
 0xabd   : > { %v2104_v41 = vpop.eup %2103 }
 0xabe   : > { %v1394_v42 = vadd.f32 1.0, %v2104_v41 }
 0xac0   : > { %v1395_v21 = vmul.f32 %v1394_v42, %v1387_v6 }
 0xac2   : > { %v1396_v43 = vpack.c.bf16 %v1395_v21, %v1395_v21 }
 0xac4   : > { %1945 = vmatmul.msk.bf16.vlgmr.msra.gmra.mxu1 %vm1430_vm8, %v1396_v43 }
 0xb41   : > { %v1443_v45 = vpop.f32.mrf.mxu1 }
 0xb42   : > { %v1444_v46 = vadd.f32 %v1443_v45, %v1405_v44 }
 0xb44   : > { %v1447_v47 = vadd.f32 %v1444_v46, %v1349_v27 }
 0xb46   : > { %v1448_v48 = vsel %vm619_vm1, %v1447_v47, 0.0 }
 0xb47   : > { %1449 = vadd.xlane.f32.xlu1 %v1448_v48 }
 0xb49   : > { %v1445_v49 = vpop.f32.mrf.mxu1 }
 0xbba   : > { %v1450_v50 = vpop.xlane.xlu1 %1449 }
 0xbbb   : > { %v1451_v51 = vmul.f32 %v1450_v50, %v2531_v2 }
 0xbbd   : > { %v1452_v53 = vsub.f32 %v1447_v47, %v1451_v51 }
 0xbbf   : > { %v1453_v54 = vmul.f32 %v1452_v53, %v1452_v53 }
 0xbc1   : > { %v1454_v55 = vsel %vm619_vm1, %v1453_v54, 0.0 }
 0xbc2   : > { %1455 = vadd.xlane.f32.xlu2 %v1454_v55 }
 0xc35   : > { %v1456_v56 = vpop.xlane.xlu2 %1455 }
 0xc36   : > { %v1457_v57 = vmul.f32 %v1456_v56, %v2531_v2 }
 0xc38   : > { %v1458_v58 = vadd.f32 1e-12, %v1457_v57 }
 0xc3a   : > { %2105 = vrsqrt.f32 %v1458_v58  ;;  %vm1465_vm10 = vweird.f32 %v1458_v58 }
 0xc40   : > { %v2106_v59 = vpop.eup %2105 }
 0xc41   : > { %v1460_v60 = vmul.f32 %v2106_v59, %v1458_v58  ;;  %vm1466_vm9 = vweird.f32 %v2106_v59 }
 0xc42   : > { %vm1467_vm11 = vmor %vm1465_vm10, %vm1466_vm9 }
 0xc43   : > { %v1461_v61 = vmul.f32 %v2106_v59, %v1460_v60 }
 0xc45   : > { %v1462_v62 = vmul.f32 0.5, %v1461_v61 }
 0xc47   : > { %v1463_v63 = vsub.f32 1.5, %v1462_v62 }
 0xc49   : > { %v1464_v0 = vmul.f32 %v2106_v59, %v1463_v63 }
 0xc4b   : > { %v1468_v3 = vsel %vm1467_vm11, %v2106_v59, %v1464_v0 }
 0xc4c   : > { %v1469_v5 = vmul.f32 %v1468_v3, %v1452_v53 }
 0xc4e   : > { %v1471_v7 = vmul.f32 %v1470_v1, %v1469_v5  ;;  %1478 = sbr.rel (%p1946_p1) target bundleno = 3297 (0xce1), region = 72 }
 0xc50   : > { %v1473_v8 = vadd.f32 %v1472_v4, %v1471_v7 }
 0xc52   : > { %1474 = vst.msk [vmem:[#allocation2] sm:$0xff] %vm619_vm1, %v1473_v8 }
 0xc53   : > { %1479 = vst.msk [vmem:[%s525_s27] sm:$0xff] %vm619_vm1, %v1473_v8  ;;  %v1994_v2 = vld [vmem:[%s2674_s20 + $0x8] sm:$0xff]  ;;  %v1993_v52 = vld [vmem:[%s2674_s20] sm:$0xff]  ;;  %v1480_v9 = vpack.c.bf16 %v1473_v8, %v1473_v8 }
 0xc54   : > { %1510 = vmatpush.bf16.msra.mxu0 %v1994_v2  ;;  %v2107_v11 = vld [vmem:[%s2675_s11] ss:$0 sm:$0xff] }
 0xc58   : > { %1511 = vmatpush.bf16.msra.mxu0 %v1993_v52 }
 0xc5b   : > { %1955 = vmatmul.msk.bf16.vlgmr.msra.gmra.mxu0 %vm619_vm1, %v1480_v9 }
 0xcd8   : > { %v1513_v12 = vpop.f32.mrf.mxu0 }
 0xcd9   : > { %v1514_v13 = vadd.f32 %v2107_v11, %v1513_v12 }
 0xcdb   : > { %1517 = vst [vmem:[%s2402_s21] sm:$0xff] %v1514_v13 }
 0xce0   : > { %v1515_v14 = vpop.f32.mrf.mxu0 }
 0xce1 PF: > { %s2676_s23 = sld [smem:[#allocation9_spill]]  ;;  %s1535_s1 = sshll.u32 %s525_s27, 4  ;;  %s1536_s1 = int_to_ptr.vmem [resolvable:$true] %s1535_s1 }
 0xce2   : > { %s2677_s28 = sld [smem:[#allocation7_spill]] }
 0xce3   : > { %s2679_s14 = sld [smem:[#allocation24_spill]] }
 0xce7   : > { %s1957_s25 = sshll.u32 %s2676_s23, 3 }
 0xce8   : > { %s2680_s4 = sand.u32 1, %s2677_s28  }
 0xce9   : > { %s1533_s26 = scalar_lea.hbm %s2679_s14, %s1957_s25  ;;  %s1519_s9 = scalar_lea.sflag [#allocation4], %s2680_s4 }
 0xcea   : > { %s1537_s2 = sshll.u32 %s1533_s26, 4  ;;  %s2128_s19 = scalar_lea.hbm %s2679_s14, 16  ;;  %s1538_s2 = int_to_ptr.hbm [resolvable:$true] %s1537_s2 }
 0xceb   : > { %s2122_s0 = sshra.s32 %s1538_s2, 4  ;;  %s2123_s0 = int_to_ptr.hbm [resolvable:$true] %s2122_s0 }
 0xcec   : > { %s2124_s21 = scalar_lea.hbm %s2123_s0, 8  ;;  %p2129_p6 = scmp.lt.s32.totalorder %s2123_s0, %s2679_s14 }
 0xced   : > { %p2125_p2 = scmp.ne.s32.totalorder %s2123_s0, %s2124_s21  ;;  %p2130_p7 = scmp.lt.s32.totalorder %s2128_s19, %s2124_s21 }
 0xcef   : > { %p2126_p4 = pnand %p2125_p2, %p2319_p3  ;;  %p2131_p8 = por %p2130_p7, %p2129_p6 }
 0xcf1   : > { %p2127_p5 = pneg %p2126_p4 }
 0xcf3   : > { %p2132_p10 = pnand %p2131_p8, %p2127_p5 }
 0xcf5   : > { %2135 = shalt.err (!%p2132_p10)
}
 0xcf6   : > { %1997 = dma.vmem_to_hbm [thread:$0]  (%p2319_p3), %s1536_s1, 128, %s1538_s2, %s1519_s9  }
 0xcf7 PF: > { %s2681_s29 = sld [smem:[#allocation12_spill]] }
 0xcf8   : > { %s2682_s27 = sld [smem:[#allocation6_spill]] }
 0xcfd   : > { %p2003_p11 = scmp.ge.s32.totalorder %s2681_s29, 2 }
 0xcfe   : > { %s1552_s18 = sand.u32 1, %s2682_s27  }
 0xcff   : > { %p2000_p12 = pnand %p2003_p11, %p2329_p9  ;;  %s1553_s11 = scalar_lea.sflag [#allocation4], %s1552_s18 }
 0xd01   : > { %p2001_p13 = pneg %p2000_p12 }
 0xd03   : > { %2169 = dma.done.wait (%p2001_p13), %s1553_s11, 128  }
 0xd04   : > { %2171 = vsyncadd (%p2001_p13), %s1553_s11, 4294967168  ;;  %s26_s28 = sadd.s32 1, %s2681_s29   ;;  %s2684_s21 = sld [smem:[#allocation7_spill]] }
 0xd05   : > { %p23_p0 = scmp.ge.s32.totalorder %s26_s28, 6   ;;  %s2685_s22 = sld [smem:[#allocation8_spill]] }
 0xd06   : > { %s2686_s23 = sld [smem:[#allocation17_spill]] }
 0xd07   : > { %s2687_s24 = sld [smem:[#allocation10_spill]]  ;;  %25 = sbr.rel (!%p23_p0) target bundleno = 13 (0xd), region = 168 }
 0xd08   : > { %s2688_s25 = sld [smem:[#allocation11_spill]] }
 0xd09   : > { %s2689_s26 = sld [smem:[#allocation13_spill]] }
 0xd0a   : > { %s2690_s27 = sld [smem:[#allocation15_spill]] }
 0xd0c   :  { %1566 = vsyncpa [#allocation4], 1 }
 0xd0d   :  { %1568 = vsyncpa [#allocation4 + $0x1], 1 }

</bundles_post_ra>
